<compile_context>
chip_gen: v5e
topology: v5e:2x2
jax: 0.10.0
libtpu: 0.0.40
codegen_flags: <defaults>
</compile_context>

<pallas_src>
import jax
import jax.numpy as jnp
import numpy as np
from jax import lax
from jax.experimental import pallas as pl
from jax.experimental.pallas import tpu as pltpu

NEG_BIG = jnp.float32(-1e30)        # exp(NEG_BIG - m) underflows to exactly 0.0
GATE_ORDER = (0, 1, 3, 2)           # torch [i, f, g, o] -> kernel [i, f, o, g]


def lstm_tagger_kernel(ids_ref, xproj_tbl_ref, w_hh_ref, b_gate_ref,
                       w_tag_ref, b_tag_ref, out_ref):
    S = ids_ref.shape[0]
    V = xproj_tbl_ref.shape[0]
    Hp4 = xproj_tbl_ref.shape[1]
    Hp = Hp4 // 4
    H3 = 3 * Hp

    # ---- fused embedding + input projection (folded offline), one MXU matmul ----
    ids = ids_ref[...]                                           # (S, 1) int32
    cols = lax.broadcasted_iota(jnp.int32, (S, V), 1)            # (S, V)
    onehot = (cols == ids).astype(jnp.float32)                   # exact row select
    xproj = (jnp.dot(onehot, xproj_tbl_ref[...],
                     preferred_element_type=jnp.float32)
             + b_gate_ref[...])                                  # (S, 4Hp)

    # ---- recurrence: h/c and lstm_out carried in registers, fully unrolled ----
    h = jnp.zeros((1, Hp), jnp.float32)
    c = jnp.zeros((1, Hp), jnp.float32)
    hs = []
    for t in range(S):                                           # S is static
        pre = xproj[t:t + 1, :]                                  # (1, 4Hp)
        # Recurrent matmuls read w_hh_ref slices *inside* the step so the weight
        # is never a 64-vreg live value across the unrolled loop.
        z_sig = pre[:, :H3] + jnp.dot(h, w_hh_ref[:, :H3],
                                      preferred_element_type=jnp.float32)
        z_g = pre[:, H3:] + jnp.dot(h, w_hh_ref[:, H3:],
                                    preferred_element_type=jnp.float32)
        sig = jax.nn.sigmoid(z_sig)                              # i|f|o in one launch
        i_g = sig[:, 0 * Hp:1 * Hp]
        f_g = sig[:, 1 * Hp:2 * Hp]
        o_g = sig[:, 2 * Hp:3 * Hp]
        g_g = jnp.tanh(z_g)
        c = f_g * c + i_g * g_g
        h = o_g * jnp.tanh(c)
        hs.append(h)

    lstm_out = jnp.concatenate(hs, axis=0)                       # (S, Hp) = 1 vreg

    # ---- hidden2tag + log_softmax (lane-dense (S, Tp) output) ----
    tag = (jnp.dot(lstm_out, w_tag_ref[...],
                   preferred_element_type=jnp.float32)
           + b_tag_ref[...])                                     # (S, Tp)
    m = jnp.max(tag, axis=1, keepdims=True)
    z = tag - m
    lse = jnp.log(jnp.sum(jnp.exp(z), axis=1, keepdims=True))
    out_ref[...] = z - lse


def lstm_tagger(sentence, xproj_table, w_hh_pad, b_gate_pad,
                w_tag_pad, b_tag_pad, tagset_size):
    S = sentence.shape[0]
    Tp = w_tag_pad.shape[1]
    ids = sentence.astype(jnp.int32).reshape(S, 1)
    vmem = pl.BlockSpec(memory_space=pltpu.MemorySpace.VMEM)
    out = pl.pallas_call(
        lstm_tagger_kernel,
        out_shape=jax.ShapeDtypeStruct((S, Tp), jnp.float32),
        in_specs=[vmem] * 6,
        out_specs=vmem,
    )(ids, xproj_table, w_hh_pad, b_gate_pad, w_tag_pad, b_tag_pad)
    return out[:, :tagset_size]


# ---------- one-time parameter preparation (padding / folding / reorder) ----------

def pad_gate_cols(w, H, Hp, order=GATE_ORDER):
    """(R, 4H) -> (R, 4*Hp): gates picked in `order`, each zero-padded to Hp lanes."""
    blocks = [w[:, k * H:(k + 1) * H] for k in order]
    blocks = [jnp.pad(b, ((0, 0), (0, Hp - H))) for b in blocks]
    return jnp.concatenate(blocks, axis=1)


def prepare_params(emb_table, w_ih, w_hh, b_ih, b_hh, w_tag, b_tag, H, T,
                   Hp=128, Tp=128):
    w_ih_pad = pad_gate_cols(w_ih.T, H, Hp)                                # (E, 4Hp)
    # Fold the input projection into the table offline (exact under one-hot select).
    xproj_table = jnp.dot(emb_table, w_ih_pad,
                          precision=lax.Precision.HIGHEST)                 # (V, 4Hp)
    w_hh_pad = jnp.pad(pad_gate_cols(w_hh.T, H, Hp),
                       ((0, Hp - H), (0, 0)))                              # (Hp, 4Hp)
    b_gate_pad = pad_gate_cols((b_ih + b_hh)[None, :], H, Hp)              # (1, 4Hp)
    w_tag_pad = jnp.pad(w_tag.T, ((0, Hp - H), (0, Tp - T)))               # (Hp, Tp)
    b_tag_pad = jnp.concatenate(
        [b_tag, jnp.full((Tp - T,), NEG_BIG, jnp.float32)])[None, :]       # (1, Tp)
    return xproj_table, w_hh_pad, b_gate_pad, w_tag_pad, b_tag_pad


# ---------- pure-JAX reference (torch.nn.LSTM semantics, batch=1) ----------

def reference(embeds, w_ih_t, w_hh_t, b_gate, w_tag_t, b_tag):
    H = w_hh_t.shape[0]

    def step(carry, x):
        h, c = carry
        gates = x[None, :] @ w_ih_t + h @ w_hh_t + b_gate
        i = jax.nn.sigmoid(gates[:, :H])
        f = jax.nn.sigmoid(gates[:, H:2 * H])
        g = jnp.tanh(gates[:, 2 * H:3 * H])
        o = jax.nn.sigmoid(gates[:, 3 * H:])
        c = f * c + i * g
        h = o * jnp.tanh(c)
        return (h, c), h[0]

    init = (jnp.zeros((1, H), jnp.float32), jnp.zeros((1, H), jnp.float32))
    _, hs = lax.scan(step, init, embeds)
    tag_space = hs @ w_tag_t + b_tag
    return jax.nn.log_softmax(tag_space, axis=1)


if __name__ == "__main__":
    vocab_size, embedding_dim, hidden_dim, tagset_size, seq_len = 16, 32, 32, 8, 8

    key = jax.random.PRNGKey(0)
    ks = jax.random.split(key, 8)

    emb_table = jax.random.normal(ks[0], (vocab_size, embedding_dim), jnp.float32)
    s = 1.0 / np.sqrt(hidden_dim)
    w_ih = jax.random.uniform(ks[1], (4 * hidden_dim, embedding_dim), jnp.float32, -s, s)
    w_hh = jax.random.uniform(ks[2], (4 * hidden_dim, hidden_dim), jnp.float32, -s, s)
    b_ih = jax.random.uniform(ks[3], (4 * hidden_dim,), jnp.float32, -s, s)
    b_hh = jax.random.uniform(ks[4], (4 * hidden_dim,), jnp.float32, -s, s)
    w_tag = jax.random.uniform(ks[5], (tagset_size, hidden_dim), jnp.float32, -s, s)
    b_tag = jax.random.uniform(ks[6], (tagset_size,), jnp.float32, -s, s)
    sentence = jax.random.randint(ks[7], (seq_len,), 0, vocab_size)

    # One-time weight padding / folding (cached in a real deployment).
    xproj_table, w_hh_pad, b_gate_pad, w_tag_pad, b_tag_pad = prepare_params(
        emb_table, w_ih, w_hh, b_ih, b_hh, w_tag, b_tag, hidden_dim, tagset_size)

    out = lstm_tagger(sentence, xproj_table, w_hh_pad, b_gate_pad,
                      w_tag_pad, b_tag_pad, tagset_size)
    out = jax.block_until_ready(out)

    # Reference uses the unpadded parameters and an explicit gather.
    embeds = emb_table[sentence]
    ref = reference(embeds, w_ih.T, w_hh.T, (b_ih + b_hh)[None, :],
                    w_tag.T, b_tag[None, :])
    np.testing.assert_allclose(np.asarray(out), np.asarray(ref),
                               rtol=1e-5, atol=1e-5)
    print("KERNEL_OK")
</pallas_src>

<mosaic_0001>
module attributes {stable_mosaic.version = 11 : i64} {
  func.func @lstm_tagger_kernel(%arg0: memref<8x1xi32, #tpu.memory_space<vmem>>, %arg1: memref<16x512xf32, #tpu.memory_space<vmem>>, %arg2: memref<128x512xf32, #tpu.memory_space<vmem>>, %arg3: memref<1x512xf32, #tpu.memory_space<vmem>>, %arg4: memref<128x128xf32, #tpu.memory_space<vmem>>, %arg5: memref<1x128xf32, #tpu.memory_space<vmem>>, %arg6: memref<8x128xf32, #tpu.memory_space<vmem>>) attributes {dimension_semantics = [], scalar_prefetch = 0 : i64, scratch_operands = 0 : i64, tpu.core_type = #tpu.core_type<tc>} {
    %c0 = arith.constant 0 : index
    %c0_0 = arith.constant 0 : index
    %0 = vector.load %arg0[%c0, %c0_0] : memref<8x1xi32, #tpu.memory_space<vmem>>, vector<8x1xi32>
    %1 = tpu.iota {dimensions = array<i32: 1>} : vector<8x16xi32>
    %2 = vector.broadcast %0 : vector<8x1xi32> to vector<8x16xi32>
    %3 = arith.cmpi eq, %1, %2 : vector<8x16xi32>
    %4 = arith.extui %3 : vector<8x16xi1> to vector<8x16xi32>
    %5 = arith.sitofp %4 : vector<8x16xi32> to vector<8x16xf32>
    %c0_1 = arith.constant 0 : index
    %c0_2 = arith.constant 0 : index
    %6 = vector.load %arg1[%c0_1, %c0_2] : memref<16x512xf32, #tpu.memory_space<vmem>>, vector<16x512xf32>
    %cst = arith.constant dense<0.000000e+00> : vector<8x512xf32>
    %7 = tpu.matmul %5, %6, %cst {dimension_numbers = #tpu.dot_dimension_numbers<[1], [0], [0], [1], [0, 0, 1, 1], [], []>} : vector<8x16xf32>, vector<16x512xf32>, vector<8x512xf32> -> vector<8x512xf32>
    %c0_3 = arith.constant 0 : index
    %c0_4 = arith.constant 0 : index
    %8 = vector.load %arg3[%c0_3, %c0_4] : memref<1x512xf32, #tpu.memory_space<vmem>>, vector<1x512xf32>
    %9 = vector.broadcast %8 : vector<1x512xf32> to vector<8x512xf32>
    %10 = arith.addf %7, %9 : vector<8x512xf32>
    %cst_5 = arith.constant 0.000000e+00 : f32
    %11 = vector.broadcast %cst_5 : f32 to vector<1x128xf32>
    %cst_6 = arith.constant 0.000000e+00 : f32
    %12 = vector.broadcast %cst_6 : f32 to vector<1x128xf32>
    %13 = vector.extract_strided_slice %10 {offsets = [0, 0], sizes = [1, 512], strides = [1, 1]} : vector<8x512xf32> to vector<1x512xf32>
    %14 = vector.extract_strided_slice %13 {offsets = [0, 0], sizes = [1, 384], strides = [1, 1]} : vector<1x512xf32> to vector<1x384xf32>
    %c0_7 = arith.constant 0 : index
    %c0_8 = arith.constant 0 : index
    %15 = vector.load %arg2[%c0_7, %c0_8] : memref<128x512xf32, #tpu.memory_space<vmem>>, vector<128x384xf32>
    %cst_9 = arith.constant dense<0.000000e+00> : vector<1x384xf32>
    %16 = tpu.matmul %11, %15, %cst_9 {dimension_numbers = #tpu.dot_dimension_numbers<[1], [0], [0], [1], [0, 0, 1, 1], [], []>} : vector<1x128xf32>, vector<128x384xf32>, vector<1x384xf32> -> vector<1x384xf32>
    %17 = arith.addf %14, %16 : vector<1x384xf32>
    %18 = vector.extract_strided_slice %13 {offsets = [0, 384], sizes = [1, 128], strides = [1, 1]} : vector<1x512xf32> to vector<1x128xf32>
    %c0_10 = arith.constant 0 : index
    %c384 = arith.constant 384 : index
    %19 = vector.load %arg2[%c0_10, %c384] : memref<128x512xf32, #tpu.memory_space<vmem>>, vector<128x128xf32>
    %cst_11 = arith.constant dense<0.000000e+00> : vector<1x128xf32>
    %20 = tpu.matmul %11, %19, %cst_11 {dimension_numbers = #tpu.dot_dimension_numbers<[1], [0], [0], [1], [0, 0, 1, 1], [], []>} : vector<1x128xf32>, vector<128x128xf32>, vector<1x128xf32> -> vector<1x128xf32>
    %21 = arith.addf %18, %20 : vector<1x128xf32>
    %22 = arith.negf %17 : vector<1x384xf32>
    %23 = math.exp %22 : vector<1x384xf32>
    %cst_12 = arith.constant 1.000000e+00 : f32
    %24 = vector.broadcast %cst_12 : f32 to vector<1x384xf32>
    %25 = arith.addf %24, %23 : vector<1x384xf32>
    %26 = arith.divf %24, %25 : vector<1x384xf32>
    %27 = vector.extract_strided_slice %26 {offsets = [0, 0], sizes = [1, 128], strides = [1, 1]} : vector<1x384xf32> to vector<1x128xf32>
    %28 = vector.extract_strided_slice %26 {offsets = [0, 128], sizes = [1, 128], strides = [1, 1]} : vector<1x384xf32> to vector<1x128xf32>
    %29 = vector.extract_strided_slice %26 {offsets = [0, 256], sizes = [1, 128], strides = [1, 1]} : vector<1x384xf32> to vector<1x128xf32>
    %30 = math.tanh %21 : vector<1x128xf32>
    %31 = arith.mulf %28, %12 : vector<1x128xf32>
    %32 = arith.mulf %27, %30 : vector<1x128xf32>
    %33 = arith.addf %31, %32 : vector<1x128xf32>
    %34 = math.tanh %33 : vector<1x128xf32>
    %35 = arith.mulf %29, %34 : vector<1x128xf32>
    %36 = vector.extract_strided_slice %10 {offsets = [1, 0], sizes = [1, 512], strides = [1, 1]} : vector<8x512xf32> to vector<1x512xf32>
    %37 = vector.extract_strided_slice %36 {offsets = [0, 0], sizes = [1, 384], strides = [1, 1]} : vector<1x512xf32> to vector<1x384xf32>
    %c0_13 = arith.constant 0 : index
    %c0_14 = arith.constant 0 : index
    %38 = vector.load %arg2[%c0_13, %c0_14] : memref<128x512xf32, #tpu.memory_space<vmem>>, vector<128x384xf32>
    %cst_15 = arith.constant dense<0.000000e+00> : vector<1x384xf32>
    %39 = tpu.matmul %35, %38, %cst_15 {dimension_numbers = #tpu.dot_dimension_numbers<[1], [0], [0], [1], [0, 0, 1, 1], [], []>} : vector<1x128xf32>, vector<128x384xf32>, vector<1x384xf32> -> vector<1x384xf32>
    %40 = arith.addf %37, %39 : vector<1x384xf32>
    %41 = vector.extract_strided_slice %36 {offsets = [0, 384], sizes = [1, 128], strides = [1, 1]} : vector<1x512xf32> to vector<1x128xf32>
    %c0_16 = arith.constant 0 : index
    %c384_17 = arith.constant 384 : index
    %42 = vector.load %arg2[%c0_16, %c384_17] : memref<128x512xf32, #tpu.memory_space<vmem>>, vector<128x128xf32>
    %cst_18 = arith.constant dense<0.000000e+00> : vector<1x128xf32>
    %43 = tpu.matmul %35, %42, %cst_18 {dimension_numbers = #tpu.dot_dimension_numbers<[1], [0], [0], [1], [0, 0, 1, 1], [], []>} : vector<1x128xf32>, vector<128x128xf32>, vector<1x128xf32> -> vector<1x128xf32>
    %44 = arith.addf %41, %43 : vector<1x128xf32>
    %45 = arith.negf %40 : vector<1x384xf32>
    %46 = math.exp %45 : vector<1x384xf32>
    %cst_19 = arith.constant 1.000000e+00 : f32
    %47 = vector.broadcast %cst_19 : f32 to vector<1x384xf32>
    %48 = arith.addf %47, %46 : vector<1x384xf32>
    %49 = arith.divf %47, %48 : vector<1x384xf32>
    %50 = vector.extract_strided_slice %49 {offsets = [0, 0], sizes = [1, 128], strides = [1, 1]} : vector<1x384xf32> to vector<1x128xf32>
    %51 = vector.extract_strided_slice %49 {offsets = [0, 128], sizes = [1, 128], strides = [1, 1]} : vector<1x384xf32> to vector<1x128xf32>
    %52 = vector.extract_strided_slice %49 {offsets = [0, 256], sizes = [1, 128], strides = [1, 1]} : vector<1x384xf32> to vector<1x128xf32>
    %53 = math.tanh %44 : vector<1x128xf32>
    %54 = arith.mulf %51, %33 : vector<1x128xf32>
    %55 = arith.mulf %50, %53 : vector<1x128xf32>
    %56 = arith.addf %54, %55 : vector<1x128xf32>
    %57 = math.tanh %56 : vector<1x128xf32>
    %58 = arith.mulf %52, %57 : vector<1x128xf32>
    %59 = vector.extract_strided_slice %10 {offsets = [2, 0], sizes = [1, 512], strides = [1, 1]} : vector<8x512xf32> to vector<1x512xf32>
    %60 = vector.extract_strided_slice %59 {offsets = [0, 0], sizes = [1, 384], strides = [1, 1]} : vector<1x512xf32> to vector<1x384xf32>
    %c0_20 = arith.constant 0 : index
    %c0_21 = arith.constant 0 : index
    %61 = vector.load %arg2[%c0_20, %c0_21] : memref<128x512xf32, #tpu.memory_space<vmem>>, vector<128x384xf32>
    %cst_22 = arith.constant dense<0.000000e+00> : vector<1x384xf32>
    %62 = tpu.matmul %58, %61, %cst_22 {dimension_numbers = #tpu.dot_dimension_numbers<[1], [0], [0], [1], [0, 0, 1, 1], [], []>} : vector<1x128xf32>, vector<128x384xf32>, vector<1x384xf32> -> vector<1x384xf32>
    %63 = arith.addf %60, %62 : vector<1x384xf32>
    %64 = vector.extract_strided_slice %59 {offsets = [0, 384], sizes = [1, 128], strides = [1, 1]} : vector<1x512xf32> to vector<1x128xf32>
    %c0_23 = arith.constant 0 : index
    %c384_24 = arith.constant 384 : index
    %65 = vector.load %arg2[%c0_23, %c384_24] : memref<128x512xf32, #tpu.memory_space<vmem>>, vector<128x128xf32>
    %cst_25 = arith.constant dense<0.000000e+00> : vector<1x128xf32>
    %66 = tpu.matmul %58, %65, %cst_25 {dimension_numbers = #tpu.dot_dimension_numbers<[1], [0], [0], [1], [0, 0, 1, 1], [], []>} : vector<1x128xf32>, vector<128x128xf32>, vector<1x128xf32> -> vector<1x128xf32>
    %67 = arith.addf %64, %66 : vector<1x128xf32>
    %68 = arith.negf %63 : vector<1x384xf32>
    %69 = math.exp %68 : vector<1x384xf32>
    %cst_26 = arith.constant 1.000000e+00 : f32
    %70 = vector.broadcast %cst_26 : f32 to vector<1x384xf32>
    %71 = arith.addf %70, %69 : vector<1x384xf32>
    %72 = arith.divf %70, %71 : vector<1x384xf32>
    %73 = vector.extract_strided_slice %72 {offsets = [0, 0], sizes = [1, 128], strides = [1, 1]} : vector<1x384xf32> to vector<1x128xf32>
    %74 = vector.extract_strided_slice %72 {offsets = [0, 128], sizes = [1, 128], strides = [1, 1]} : vector<1x384xf32> to vector<1x128xf32>
    %75 = vector.extract_strided_slice %72 {offsets = [0, 256], sizes = [1, 128], strides = [1, 1]} : vector<1x384xf32> to vector<1x128xf32>
    %76 = math.tanh %67 : vector<1x128xf32>
    %77 = arith.mulf %74, %56 : vector<1x128xf32>
    %78 = arith.mulf %73, %76 : vector<1x128xf32>
    %79 = arith.addf %77, %78 : vector<1x128xf32>
    %80 = math.tanh %79 : vector<1x128xf32>
    %81 = arith.mulf %75, %80 : vector<1x128xf32>
    %82 = vector.extract_strided_slice %10 {offsets = [3, 0], sizes = [1, 512], strides = [1, 1]} : vector<8x512xf32> to vector<1x512xf32>
    %83 = vector.extract_strided_slice %82 {offsets = [0, 0], sizes = [1, 384], strides = [1, 1]} : vector<1x512xf32> to vector<1x384xf32>
    %c0_27 = arith.constant 0 : index
    %c0_28 = arith.constant 0 : index
    %84 = vector.load %arg2[%c0_27, %c0_28] : memref<128x512xf32, #tpu.memory_space<vmem>>, vector<128x384xf32>
    %cst_29 = arith.constant dense<0.000000e+00> : vector<1x384xf32>
    %85 = tpu.matmul %81, %84, %cst_29 {dimension_numbers = #tpu.dot_dimension_numbers<[1], [0], [0], [1], [0, 0, 1, 1], [], []>} : vector<1x128xf32>, vector<128x384xf32>, vector<1x384xf32> -> vector<1x384xf32>
    %86 = arith.addf %83, %85 : vector<1x384xf32>
    %87 = vector.extract_strided_slice %82 {offsets = [0, 384], sizes = [1, 128], strides = [1, 1]} : vector<1x512xf32> to vector<1x128xf32>
    %c0_30 = arith.constant 0 : index
    %c384_31 = arith.constant 384 : index
    %88 = vector.load %arg2[%c0_30, %c384_31] : memref<128x512xf32, #tpu.memory_space<vmem>>, vector<128x128xf32>
    %cst_32 = arith.constant dense<0.000000e+00> : vector<1x128xf32>
    %89 = tpu.matmul %81, %88, %cst_32 {dimension_numbers = #tpu.dot_dimension_numbers<[1], [0], [0], [1], [0, 0, 1, 1], [], []>} : vector<1x128xf32>, vector<128x128xf32>, vector<1x128xf32> -> vector<1x128xf32>
    %90 = arith.addf %87, %89 : vector<1x128xf32>
    %91 = arith.negf %86 : vector<1x384xf32>
    %92 = math.exp %91 : vector<1x384xf32>
    %cst_33 = arith.constant 1.000000e+00 : f32
    %93 = vector.broadcast %cst_33 : f32 to vector<1x384xf32>
    %94 = arith.addf %93, %92 : vector<1x384xf32>
    %95 = arith.divf %93, %94 : vector<1x384xf32>
    %96 = vector.extract_strided_slice %95 {offsets = [0, 0], sizes = [1, 128], strides = [1, 1]} : vector<1x384xf32> to vector<1x128xf32>
    %97 = vector.extract_strided_slice %95 {offsets = [0, 128], sizes = [1, 128], strides = [1, 1]} : vector<1x384xf32> to vector<1x128xf32>
    %98 = vector.extract_strided_slice %95 {offsets = [0, 256], sizes = [1, 128], strides = [1, 1]} : vector<1x384xf32> to vector<1x128xf32>
    %99 = math.tanh %90 : vector<1x128xf32>
    %100 = arith.mulf %97, %79 : vector<1x128xf32>
    %101 = arith.mulf %96, %99 : vector<1x128xf32>
    %102 = arith.addf %100, %101 : vector<1x128xf32>
    %103 = math.tanh %102 : vector<1x128xf32>
    %104 = arith.mulf %98, %103 : vector<1x128xf32>
    %105 = vector.extract_strided_slice %10 {offsets = [4, 0], sizes = [1, 512], strides = [1, 1]} : vector<8x512xf32> to vector<1x512xf32>
    %106 = vector.extract_strided_slice %105 {offsets = [0, 0], sizes = [1, 384], strides = [1, 1]} : vector<1x512xf32> to vector<1x384xf32>
    %c0_34 = arith.constant 0 : index
    %c0_35 = arith.constant 0 : index
    %107 = vector.load %arg2[%c0_34, %c0_35] : memref<128x512xf32, #tpu.memory_space<vmem>>, vector<128x384xf32>
    %cst_36 = arith.constant dense<0.000000e+00> : vector<1x384xf32>
    %108 = tpu.matmul %104, %107, %cst_36 {dimension_numbers = #tpu.dot_dimension_numbers<[1], [0], [0], [1], [0, 0, 1, 1], [], []>} : vector<1x128xf32>, vector<128x384xf32>, vector<1x384xf32> -> vector<1x384xf32>
    %109 = arith.addf %106, %108 : vector<1x384xf32>
    %110 = vector.extract_strided_slice %105 {offsets = [0, 384], sizes = [1, 128], strides = [1, 1]} : vector<1x512xf32> to vector<1x128xf32>
    %c0_37 = arith.constant 0 : index
    %c384_38 = arith.constant 384 : index
    %111 = vector.load %arg2[%c0_37, %c384_38] : memref<128x512xf32, #tpu.memory_space<vmem>>, vector<128x128xf32>
    %cst_39 = arith.constant dense<0.000000e+00> : vector<1x128xf32>
    %112 = tpu.matmul %104, %111, %cst_39 {dimension_numbers = #tpu.dot_dimension_numbers<[1], [0], [0], [1], [0, 0, 1, 1], [], []>} : vector<1x128xf32>, vector<128x128xf32>, vector<1x128xf32> -> vector<1x128xf32>
    %113 = arith.addf %110, %112 : vector<1x128xf32>
    %114 = arith.negf %109 : vector<1x384xf32>
    %115 = math.exp %114 : vector<1x384xf32>
    %cst_40 = arith.constant 1.000000e+00 : f32
    %116 = vector.broadcast %cst_40 : f32 to vector<1x384xf32>
    %117 = arith.addf %116, %115 : vector<1x384xf32>
    %118 = arith.divf %116, %117 : vector<1x384xf32>
    %119 = vector.extract_strided_slice %118 {offsets = [0, 0], sizes = [1, 128], strides = [1, 1]} : vector<1x384xf32> to vector<1x128xf32>
    %120 = vector.extract_strided_slice %118 {offsets = [0, 128], sizes = [1, 128], strides = [1, 1]} : vector<1x384xf32> to vector<1x128xf32>
    %121 = vector.extract_strided_slice %118 {offsets = [0, 256], sizes = [1, 128], strides = [1, 1]} : vector<1x384xf32> to vector<1x128xf32>
    %122 = math.tanh %113 : vector<1x128xf32>
    %123 = arith.mulf %120, %102 : vector<1x128xf32>
    %124 = arith.mulf %119, %122 : vector<1x128xf32>
    %125 = arith.addf %123, %124 : vector<1x128xf32>
    %126 = math.tanh %125 : vector<1x128xf32>
    %127 = arith.mulf %121, %126 : vector<1x128xf32>
    %128 = vector.extract_strided_slice %10 {offsets = [5, 0], sizes = [1, 512], strides = [1, 1]} : vector<8x512xf32> to vector<1x512xf32>
    %129 = vector.extract_strided_slice %128 {offsets = [0, 0], sizes = [1, 384], strides = [1, 1]} : vector<1x512xf32> to vector<1x384xf32>
    %c0_41 = arith.constant 0 : index
    %c0_42 = arith.constant 0 : index
    %130 = vector.load %arg2[%c0_41, %c0_42] : memref<128x512xf32, #tpu.memory_space<vmem>>, vector<128x384xf32>
    %cst_43 = arith.constant dense<0.000000e+00> : vector<1x384xf32>
    %131 = tpu.matmul %127, %130, %cst_43 {dimension_numbers = #tpu.dot_dimension_numbers<[1], [0], [0], [1], [0, 0, 1, 1], [], []>} : vector<1x128xf32>, vector<128x384xf32>, vector<1x384xf32> -> vector<1x384xf32>
    %132 = arith.addf %129, %131 : vector<1x384xf32>
    %133 = vector.extract_strided_slice %128 {offsets = [0, 384], sizes = [1, 128], strides = [1, 1]} : vector<1x512xf32> to vector<1x128xf32>
    %c0_44 = arith.constant 0 : index
    %c384_45 = arith.constant 384 : index
    %134 = vector.load %arg2[%c0_44, %c384_45] : memref<128x512xf32, #tpu.memory_space<vmem>>, vector<128x128xf32>
    %cst_46 = arith.constant dense<0.000000e+00> : vector<1x128xf32>
    %135 = tpu.matmul %127, %134, %cst_46 {dimension_numbers = #tpu.dot_dimension_numbers<[1], [0], [0], [1], [0, 0, 1, 1], [], []>} : vector<1x128xf32>, vector<128x128xf32>, vector<1x128xf32> -> vector<1x128xf32>
    %136 = arith.addf %133, %135 : vector<1x128xf32>
    %137 = arith.negf %132 : vector<1x384xf32>
    %138 = math.exp %137 : vector<1x384xf32>
    %cst_47 = arith.constant 1.000000e+00 : f32
    %139 = vector.broadcast %cst_47 : f32 to vector<1x384xf32>
    %140 = arith.addf %139, %138 : vector<1x384xf32>
    %141 = arith.divf %139, %140 : vector<1x384xf32>
    %142 = vector.extract_strided_slice %141 {offsets = [0, 0], sizes = [1, 128], strides = [1, 1]} : vector<1x384xf32> to vector<1x128xf32>
    %143 = vector.extract_strided_slice %141 {offsets = [0, 128], sizes = [1, 128], strides = [1, 1]} : vector<1x384xf32> to vector<1x128xf32>
    %144 = vector.extract_strided_slice %141 {offsets = [0, 256], sizes = [1, 128], strides = [1, 1]} : vector<1x384xf32> to vector<1x128xf32>
    %145 = math.tanh %136 : vector<1x128xf32>
    %146 = arith.mulf %143, %125 : vector<1x128xf32>
    %147 = arith.mulf %142, %145 : vector<1x128xf32>
    %148 = arith.addf %146, %147 : vector<1x128xf32>
    %149 = math.tanh %148 : vector<1x128xf32>
    %150 = arith.mulf %144, %149 : vector<1x128xf32>
    %151 = vector.extract_strided_slice %10 {offsets = [6, 0], sizes = [1, 512], strides = [1, 1]} : vector<8x512xf32> to vector<1x512xf32>
    %152 = vector.extract_strided_slice %151 {offsets = [0, 0], sizes = [1, 384], strides = [1, 1]} : vector<1x512xf32> to vector<1x384xf32>
    %c0_48 = arith.constant 0 : index
    %c0_49 = arith.constant 0 : index
    %153 = vector.load %arg2[%c0_48, %c0_49] : memref<128x512xf32, #tpu.memory_space<vmem>>, vector<128x384xf32>
    %cst_50 = arith.constant dense<0.000000e+00> : vector<1x384xf32>
    %154 = tpu.matmul %150, %153, %cst_50 {dimension_numbers = #tpu.dot_dimension_numbers<[1], [0], [0], [1], [0, 0, 1, 1], [], []>} : vector<1x128xf32>, vector<128x384xf32>, vector<1x384xf32> -> vector<1x384xf32>
    %155 = arith.addf %152, %154 : vector<1x384xf32>
    %156 = vector.extract_strided_slice %151 {offsets = [0, 384], sizes = [1, 128], strides = [1, 1]} : vector<1x512xf32> to vector<1x128xf32>
    %c0_51 = arith.constant 0 : index
    %c384_52 = arith.constant 384 : index
    %157 = vector.load %arg2[%c0_51, %c384_52] : memref<128x512xf32, #tpu.memory_space<vmem>>, vector<128x128xf32>
    %cst_53 = arith.constant dense<0.000000e+00> : vector<1x128xf32>
    %158 = tpu.matmul %150, %157, %cst_53 {dimension_numbers = #tpu.dot_dimension_numbers<[1], [0], [0], [1], [0, 0, 1, 1], [], []>} : vector<1x128xf32>, vector<128x128xf32>, vector<1x128xf32> -> vector<1x128xf32>
    %159 = arith.addf %156, %158 : vector<1x128xf32>
    %160 = arith.negf %155 : vector<1x384xf32>
    %161 = math.exp %160 : vector<1x384xf32>
    %cst_54 = arith.constant 1.000000e+00 : f32
    %162 = vector.broadcast %cst_54 : f32 to vector<1x384xf32>
    %163 = arith.addf %162, %161 : vector<1x384xf32>
    %164 = arith.divf %162, %163 : vector<1x384xf32>
    %165 = vector.extract_strided_slice %164 {offsets = [0, 0], sizes = [1, 128], strides = [1, 1]} : vector<1x384xf32> to vector<1x128xf32>
    %166 = vector.extract_strided_slice %164 {offsets = [0, 128], sizes = [1, 128], strides = [1, 1]} : vector<1x384xf32> to vector<1x128xf32>
    %167 = vector.extract_strided_slice %164 {offsets = [0, 256], sizes = [1, 128], strides = [1, 1]} : vector<1x384xf32> to vector<1x128xf32>
    %168 = math.tanh %159 : vector<1x128xf32>
    %169 = arith.mulf %166, %148 : vector<1x128xf32>
    %170 = arith.mulf %165, %168 : vector<1x128xf32>
    %171 = arith.addf %169, %170 : vector<1x128xf32>
    %172 = math.tanh %171 : vector<1x128xf32>
    %173 = arith.mulf %167, %172 : vector<1x128xf32>
    %174 = vector.extract_strided_slice %10 {offsets = [7, 0], sizes = [1, 512], strides = [1, 1]} : vector<8x512xf32> to vector<1x512xf32>
    %175 = vector.extract_strided_slice %174 {offsets = [0, 0], sizes = [1, 384], strides = [1, 1]} : vector<1x512xf32> to vector<1x384xf32>
    %c0_55 = arith.constant 0 : index
    %c0_56 = arith.constant 0 : index
    %176 = vector.load %arg2[%c0_55, %c0_56] : memref<128x512xf32, #tpu.memory_space<vmem>>, vector<128x384xf32>
    %cst_57 = arith.constant dense<0.000000e+00> : vector<1x384xf32>
    %177 = tpu.matmul %173, %176, %cst_57 {dimension_numbers = #tpu.dot_dimension_numbers<[1], [0], [0], [1], [0, 0, 1, 1], [], []>} : vector<1x128xf32>, vector<128x384xf32>, vector<1x384xf32> -> vector<1x384xf32>
    %178 = arith.addf %175, %177 : vector<1x384xf32>
    %179 = vector.extract_strided_slice %174 {offsets = [0, 384], sizes = [1, 128], strides = [1, 1]} : vector<1x512xf32> to vector<1x128xf32>
    %c0_58 = arith.constant 0 : index
    %c384_59 = arith.constant 384 : index
    %180 = vector.load %arg2[%c0_58, %c384_59] : memref<128x512xf32, #tpu.memory_space<vmem>>, vector<128x128xf32>
    %cst_60 = arith.constant dense<0.000000e+00> : vector<1x128xf32>
    %181 = tpu.matmul %173, %180, %cst_60 {dimension_numbers = #tpu.dot_dimension_numbers<[1], [0], [0], [1], [0, 0, 1, 1], [], []>} : vector<1x128xf32>, vector<128x128xf32>, vector<1x128xf32> -> vector<1x128xf32>
    %182 = arith.addf %179, %181 : vector<1x128xf32>
    %183 = arith.negf %178 : vector<1x384xf32>
    %184 = math.exp %183 : vector<1x384xf32>
    %cst_61 = arith.constant 1.000000e+00 : f32
    %185 = vector.broadcast %cst_61 : f32 to vector<1x384xf32>
    %186 = arith.addf %185, %184 : vector<1x384xf32>
    %187 = arith.divf %185, %186 : vector<1x384xf32>
    %188 = vector.extract_strided_slice %187 {offsets = [0, 0], sizes = [1, 128], strides = [1, 1]} : vector<1x384xf32> to vector<1x128xf32>
    %189 = vector.extract_strided_slice %187 {offsets = [0, 128], sizes = [1, 128], strides = [1, 1]} : vector<1x384xf32> to vector<1x128xf32>
    %190 = vector.extract_strided_slice %187 {offsets = [0, 256], sizes = [1, 128], strides = [1, 1]} : vector<1x384xf32> to vector<1x128xf32>
    %191 = math.tanh %182 : vector<1x128xf32>
    %192 = arith.mulf %189, %171 : vector<1x128xf32>
    %193 = arith.mulf %188, %191 : vector<1x128xf32>
    %194 = arith.addf %192, %193 : vector<1x128xf32>
    %195 = math.tanh %194 : vector<1x128xf32>
    %196 = arith.mulf %190, %195 : vector<1x128xf32>
    %197 = tpu.concatenate %35, %58, %81, %104, %127, %150, %173, %196 in 0 : vector<1x128xf32>, vector<1x128xf32>, vector<1x128xf32>, vector<1x128xf32>, vector<1x128xf32>, vector<1x128xf32>, vector<1x128xf32>, vector<1x128xf32> -> vector<8x128xf32>
    %c0_62 = arith.constant 0 : index
    %c0_63 = arith.constant 0 : index
    %198 = vector.load %arg4[%c0_62, %c0_63] : memref<128x128xf32, #tpu.memory_space<vmem>>, vector<128x128xf32>
    %cst_64 = arith.constant dense<0.000000e+00> : vector<8x128xf32>
    %199 = tpu.matmul %197, %198, %cst_64 {dimension_numbers = #tpu.dot_dimension_numbers<[1], [0], [0], [1], [0, 0, 1, 1], [], []>} : vector<8x128xf32>, vector<128x128xf32>, vector<8x128xf32> -> vector<8x128xf32>
    %c0_65 = arith.constant 0 : index
    %c0_66 = arith.constant 0 : index
    %200 = vector.load %arg5[%c0_65, %c0_66] : memref<1x128xf32, #tpu.memory_space<vmem>>, vector<1x128xf32>
    %201 = vector.broadcast %200 : vector<1x128xf32> to vector<8x128xf32>
    %202 = arith.addf %199, %201 : vector<8x128xf32>
    %cst_67 = arith.constant dense<0xFF800000> : vector<8xf32>
    %203 = vector.multi_reduction <maximumf>, %202, %cst_67 [1] : vector<8x128xf32> to vector<8xf32>
    %204 = vector.shape_cast %203 : vector<8xf32> to vector<8x1xf32>
    %205 = vector.broadcast %204 : vector<8x1xf32> to vector<8x128xf32>
    %206 = arith.subf %202, %205 : vector<8x128xf32>
    %207 = math.exp %206 : vector<8x128xf32>
    %cst_68 = arith.constant dense<0.000000e+00> : vector<8xf32>
    %208 = vector.multi_reduction <add>, %207, %cst_68 [1] : vector<8x128xf32> to vector<8xf32>
    %209 = vector.shape_cast %208 : vector<8xf32> to vector<8x1xf32>
    %210 = math.log %209 : vector<8x1xf32>
    %211 = vector.broadcast %210 : vector<8x1xf32> to vector<8x128xf32>
    %212 = arith.subf %206, %211 : vector<8x128xf32>
    %c0_69 = arith.constant 0 : index
    %c0_70 = arith.constant 0 : index
    %213 = vector.load %arg6[%c0_69, %c0_70] : memref<8x128xf32, #tpu.memory_space<vmem>>, vector<8x128xf32>
    tpu.vector_store %arg6[%c0_69, %c0_70], %212 {strides = array<i32>} : memref<8x128xf32, #tpu.memory_space<vmem>>, vector<8x128xf32>,
    return
  }
}

</mosaic_0001>

<bundles_post_ra>
// kernel: tpu_custom_call.1
= control target key start
LH: loop header
LB: loop body
LE: loop exit
PB: predicated region body
PF: predicated region fallthrough
CT: control target
= control target key end

     0   :  { %11 = vsyncpa [#allocation3], 0  ;;  %s2904_s0 = inlined_call_operand.vmem [shape: s32[8,1], index: 0, kind: input, shape index: {}]   ;;  %s2905_s1 = inlined_call_operand.hbm [shape: f32[16,512], index: 1, kind: input, shape index: {}]   ;;  %s2906_s2 = inlined_call_operand.hbm [shape: f32[128,512], index: 2, kind: input, shape index: {}]   ;;  %s2907_s3 = inlined_call_operand.vmem [shape: f32[1,512], index: 3, kind: input, shape index: {}]   ;;  %s2908_s4 = inlined_call_operand.hbm [shape: f32[128,128], index: 4, kind: input, shape index: {}]   ;;  %s2909_s5 = inlined_call_operand.vmem [shape: f32[1,128], index: 5, kind: input, shape index: {}]   ;;  %s2910_s6 = inlined_call_operand.hbm [shape: f32[8,128], index: 6, kind: output, shape index: {}]  }
   0x1   :  { %12 = vsyncpa [#allocation6], 0 }
   0x2   :  { %13 = vsyncpa [#allocation4], 0  ;;  %s33_s23 = sshll.u32 %s2906_s2, 4  ;;  %s1967_s24 = smov [#allocation5]   ;;  %s34_s23 = int_to_ptr.hbm [resolvable:$true] %s33_s23 }
   0x3   :  { %s35_s25 = sshll.u32 %s1967_s24, 4  ;;  %s20_s28 = sshll.u32 %s2905_s1, 4  ;;  %s36_s25 = int_to_ptr.vmem [resolvable:$true] %s35_s25  ;;  %s21_s28 = int_to_ptr.hbm [resolvable:$true] %s20_s28 }
   0x4   :  { %s1968_s29 = smov 512   ;;  %s1969_s30 = smov 32  }
   0x5   :  { %41 = dma.hbm_to_vmem [thread:$0]  %s34_s23, 8192, %s36_s25, [#allocation6], %s1968_s29, %s1968_s29, %s1969_s30  }
   0x6   :  { %s1970_s7 = smov [#allocation2]   ;;  %s48_s11 = sshll.u32 %s2908_s4, 4  ;;  %s49_s11 = int_to_ptr.hbm [resolvable:$true] %s48_s11 }
   0x7   :  { %s22_s8 = sshll.u32 %s1970_s7, 4  ;;  %s1971_s2 = smov [#allocation7]   ;;  %s23_s8 = int_to_ptr.vmem [resolvable:$true] %s22_s8 }
   0x8   :  { %28 = dma.hbm_to_vmem [thread:$0]  %s21_s28, 1024, %s23_s8, [#allocation3], %s1968_s29, %s1968_s29, %s1969_s30  }
   0x9   :  { %s50_s12 = sshll.u32 %s1971_s2, 4  ;;  %s1972_s13 = smov 128   ;;  %s51_s12 = int_to_ptr.vmem [resolvable:$true] %s50_s12 }
   0xa   :  { %s1973_s14 = smov 8  }
   0xb   :  { %56 = dma.hbm_to_vmem [thread:$0]  %s49_s11, 2048, %s51_s12, [#allocation6], %s1972_s13, %s1972_s13, %s1973_s14  }
   0xc   :  { %1961 = dma.done.wait [#allocation3], 1024  }
   0xd   :  { %1962 = vsyncadd [#allocation3], 4294966272 }
   0xe   :  { %1963 = dma.done.wait [#allocation6], 10240  }
   0xf   :  { %1964 = vsyncadd [#allocation6], 4294957056  ;;  %v1974_v0 = vmov 0   ;;  %v71_v1 = vld [vmem:[%s2904_s0] sm:$0xff]  ;;  %v86_v4 = vld [vmem:[#allocation2 + $0x30] sm:$0xff]  ;;  %v2911_v52 = vmov 0.0   ;;  %v72_v59 = vlaneseq }
  0x10   :  { %1667 = vset.pattern.permute.xlu0 %v1974_v0  ;;  %v2024_v2 = vld [vmem:[#allocation5 + $0x1e0] sm:$0xff]  ;;  %v87_v5 = vld [vmem:[#allocation2 + $0x38] sm:$0xff]  ;;  %156 = vmatpush.msra.mxu2 %v86_v4  ;;  %v82_v7 = vld [vmem:[#allocation2 + $0x10] sm:$0xff]  ;;  %vm98_vm0 = vcmask 130048   ;;  %s1976_s17 = smov [#allocation8]   ;;  %s1617_s21 = sshll.u32 %s2910_s6, 4  ;;  %s1618_s21 = int_to_ptr.hbm [resolvable:$true] %s1617_s21 }
  0x11   :  { %v2026_v3 = vld [vmem:[#allocation5 + $0x1c0] sm:$0xff]  ;;  %75 = vperm.xlu0 %1667, %v71_v1   ;;  %230 = vmatpush.msra.mxu0 %v2024_v2  ;;  %v83_v8 = vld [vmem:[#allocation2 + $0x18] sm:$0xff]  ;;  %v2032_v9 = vld [vmem:[#allocation5 + $0x1f0] sm:$0xff]  ;;  %v73_v60 = vand.u32 127, %v72_v59  ;;  %s1615_s18 = sshll.u32 %s1976_s17, 4  ;;  %s1616_s18 = int_to_ptr.vmem [resolvable:$true] %s1615_s18 }
  0x12   :  { %176 = vmatpush.msra.mxu3 %v87_v5  ;;  %v2029_v6 = vld [vmem:[#allocation5 + $0x1a0] sm:$0xff]  ;;  %v2034_v10 = vld [vmem:[#allocation5 + $0x1f8] sm:$0xff]  ;;  %157 = vmatpush.msra.mxu2 %v82_v7  ;;  %v2038_v12 = vld [vmem:[#allocation5 + $0x1d0] sm:$0xff] }
  0x13   :  { %231 = vmatpush.msra.mxu0 %v2026_v3  ;;  %v2036_v11 = vld [vmem:[#allocation5 + $0x180] sm:$0xff]  ;;  %v2042_v13 = vld [vmem:[#allocation5 + $0x1d8] sm:$0xff]  ;;  %v2047_v15 = vld [vmem:[#allocation5 + $0x1b0] sm:$0xff] }
  0x14   :  { %177 = vmatpush.msra.mxu3 %v83_v8  ;;  %270 = vmatpush.msrb.mxu2 %v2032_v9  ;;  %v2045_v14 = vld [vmem:[#allocation5 + $0x160] sm:$0xff]  ;;  %v2051_v16 = vld [vmem:[#allocation5 + $0x1b8] sm:$0xff]  ;;  %v2056_v18 = vld [vmem:[#allocation5 + $0x190] sm:$0xff] }
  0x15   :  { %232 = vmatpush.msra.mxu0 %v2029_v6  ;;  %v2054_v17 = vld [vmem:[#allocation5 + $0x140] sm:$0xff]  ;;  %v2060_v19 = vld [vmem:[#allocation5 + $0x198] sm:$0xff]  ;;  %v2065_v21 = vld [vmem:[#allocation5 + $0x170] sm:$0xff] }
  0x16   :  { %309 = vmatpush.msrb.mxu3 %v2034_v10  ;;  %271 = vmatpush.msrb.mxu2 %v2038_v12  ;;  %v2063_v20 = vld [vmem:[#allocation5 + $0x120] sm:$0xff]  ;;  %v2069_v22 = vld [vmem:[#allocation5 + $0x178] sm:$0xff]  ;;  %v2074_v25 = vld [vmem:[#allocation5 + $0x150] sm:$0xff] }
  0x17   :  { %233 = vmatpush.msra.mxu0 %v2036_v11  ;;  %v84_v23 = vld [vmem:[#allocation2 + $0x20] sm:$0xff]  ;;  %v2078_v26 = vld [vmem:[#allocation5 + $0x158] sm:$0xff]  ;;  %v85_v28 = vld [vmem:[#allocation2 + $0x28] sm:$0xff] }
  0x18   :  { %310 = vmatpush.msrb.mxu3 %v2042_v13  ;;  %272 = vmatpush.msrb.mxu2 %v2047_v15  ;;  %v2072_v24 = vld [vmem:[#allocation5 + $0x100] sm:$0xff]  ;;  %v2083_v30 = vld [vmem:[#allocation5 + $0x130] sm:$0xff]  ;;  %v2087_v31 = vld [vmem:[#allocation5 + $0x138] sm:$0xff] }
  0x19   :  { %234 = vmatpush.msra.mxu0 %v2045_v14  ;;  %116 = vmatpush.msra.mxu1 %v84_v23  ;;  %v80_v27 = vld [vmem:[#allocation2] sm:$0xff]  ;;  %v2092_v33 = vld [vmem:[#allocation5 + $0x110] sm:$0xff]  ;;  %v2096_v34 = vld [vmem:[#allocation5 + $0x118] sm:$0xff] }
  0x1a   :  { %311 = vmatpush.msrb.mxu3 %v2051_v16  ;;  %273 = vmatpush.msrb.mxu2 %v2056_v18  ;;  %v2081_v29 = vld [vmem:[#allocation5 + $0xe0] sm:$0xff]  ;;  %v2101_v36 = vld [vmem:[#allocation5 + $0xf0] sm:$0xff]  ;;  %v2105_v37 = vld [vmem:[#allocation5 + $0xf8] sm:$0xff] }
  0x1b   :  { %235 = vmatpush.msra.mxu0 %v2054_v17  ;;  %3033 = vst [vmem:[#allocation12_spill] sm:$0xff] %v2081_v29  ;;  %117 = vmatpush.msra.mxu1 %v80_v27  ;;  %v2090_v32 = vld [vmem:[#allocation5 + $0xc0] sm:$0xff]  ;;  %v2110_v39 = vld [vmem:[#allocation5 + $0xd0] sm:$0xff]  ;;  %v2114_v40 = vld [vmem:[#allocation5 + $0xd8] sm:$0xff] }
  0x1c   :  { %312 = vmatpush.msrb.mxu3 %v2060_v19  ;;  %274 = vmatpush.msrb.mxu2 %v2065_v21  ;;  %v2099_v35 = vld [vmem:[#allocation5 + $0xa0] sm:$0xff]  ;;  %3036 = vst [vmem:[#allocation15_spill] sm:$0xff] %v2114_v40  ;;  %v2119_v42 = vld [vmem:[#allocation5 + $0xb0] sm:$0xff]  ;;  %v2123_v43 = vld [vmem:[#allocation5 + $0xb8] sm:$0xff] }
  0x1d   :  { %236 = vmatpush.msra.mxu0 %v2063_v20  ;;  %136 = vmatpush.msrb.mxu1 %v85_v28  ;;  %3034 = vst [vmem:[#allocation13_spill] sm:$0xff] %v2099_v35  ;;  %v2108_v38 = vld [vmem:[#allocation5 + $0x80] sm:$0xff]  ;;  %v81_v45 = vld [vmem:[#allocation2 + $0x8] sm:$0xff]  ;;  %v2134_v47 = vld [vmem:[#allocation5 + $0x90] sm:$0xff] }
  0x1e   :  { %313 = vmatpush.msrb.mxu3 %v2069_v22  ;;  %275 = vmatpush.msrb.mxu2 %v2074_v25  ;;  %3035 = vst [vmem:[#allocation14_spill] sm:$0xff] %v2108_v38  ;;  %v2117_v41 = vld [vmem:[#allocation5 + $0x60] sm:$0xff]  ;;  %v2137_v48 = vld [vmem:[#allocation5 + $0x98] sm:$0xff]  ;;  %v2143_v50 = vld [vmem:[#allocation5 + $0x70] sm:$0xff] }
  0x1f   :  { %237 = vmatpush.msra.mxu0 %v2072_v24  ;;  %3037 = vst [vmem:[#allocation16_spill] sm:$0xff] %v2117_v41  ;;  %v2126_v44 = vld [vmem:[#allocation5 + $0x40] sm:$0xff]  ;;  %137 = vmatpush.msrb.mxu1 %v81_v45  ;;  %v2145_v51 = vld [vmem:[#allocation5 + $0x78] sm:$0xff]  ;;  %v2151_v53 = vld [vmem:[#allocation5 + $0x50] sm:$0xff] }
  0x20   :  { %314 = vmatpush.msrb.mxu3 %v2078_v26  ;;  %276 = vmatpush.msrb.mxu2 %v2083_v30  ;;  %3038 = vst [vmem:[#allocation17_spill] sm:$0xff] %v2119_v42  ;;  %v2132_v46 = vld [vmem:[#allocation5 + $0x20] sm:$0xff]  ;;  %v2153_v54 = vld [vmem:[#allocation5 + $0x58] sm:$0xff]  ;;  %v2158_v55 = vld [vmem:[#allocation5 + $0x30] sm:$0xff] }
  0x21   :  { %238 = vmatpush.msra.mxu0 %v2081_v29  ;;  %3039 = vst [vmem:[#allocation18_spill] sm:$0xff] %v2123_v43  ;;  %v2141_v49 = vld [vmem:[#allocation5] sm:$0xff]  ;;  %v2160_v56 = vld [vmem:[#allocation5 + $0x38] sm:$0xff]  ;;  %v2165_v57 = vld [vmem:[#allocation5 + $0x10] sm:$0xff] }
  0x22   :  { %315 = vmatpush.msrb.mxu3 %v2087_v31  ;;  %277 = vmatpush.msrb.mxu2 %v2092_v33  ;;  %3040 = vst [vmem:[#allocation19_spill] sm:$0xff] %v2126_v44  ;;  %v2167_v58 = vld [vmem:[#allocation5 + $0x18] sm:$0xff]  ;;  %v2182_v62 = vld [vmem:[#allocation5 + $0x1e8] sm:$0xff] }
  0x23   :  { %239 = vmatpush.msra.mxu0 %v2090_v32  ;;  %3041 = vst [vmem:[#allocation20_spill] sm:$0xff] %v2132_v46  ;;  %v2188_v0 = vld [vmem:[#allocation5 + $0x1c8] sm:$0xff] }
  0x24   :  { %316 = vmatpush.msrb.mxu3 %v2096_v34  ;;  %278 = vmatpush.msrb.mxu2 %v2101_v36  ;;  %3042 = vst [vmem:[#allocation21_spill] sm:$0xff] %v2134_v47  ;;  %v2192_v1 = vld [vmem:[#allocation5 + $0x1a8] sm:$0xff] }
  0x25   :  { %240 = vmatpush.msra.mxu0 %v2099_v35  ;;  %3043 = vst [vmem:[#allocation22_spill] sm:$0xff] %v2137_v48  ;;  %v2198_v4 = vld [vmem:[#allocation5 + $0x188] sm:$0xff] }
  0x26   :  { %317 = vmatpush.msrb.mxu3 %v2105_v37  ;;  %279 = vmatpush.msrb.mxu2 %v2110_v39  ;;  %3044 = vst [vmem:[#allocation23_spill] sm:$0xff] %v2141_v49  ;;  %v2204_v5 = vld [vmem:[#allocation5 + $0x168] sm:$0xff] }
  0x27   :  { %241 = vmatpush.msra.mxu0 %v2108_v38  ;;  %3045 = vst [vmem:[#allocation24_spill] sm:$0xff] %v2143_v50  ;;  %v2212_v7 = vld [vmem:[#allocation5 + $0x148] sm:$0xff] }
  0x28   :  { %318 = vmatpush.msrb.mxu3 %v2114_v40  ;;  %280 = vmatpush.msrb.mxu2 %v2119_v42  ;;  %3046 = vst [vmem:[#allocation25_spill] sm:$0xff] %v2145_v51  ;;  %v2216_v8 = vld [vmem:[#allocation5 + $0x128] sm:$0xff] }
  0x29   :  { %242 = vmatpush.msra.mxu0 %v2117_v41  ;;  %3047 = vst [vmem:[#allocation26_spill] sm:$0xff] %v2151_v53  ;;  %v2222_v23 = vld [vmem:[#allocation5 + $0x108] sm:$0xff] }
  0x2a   :  { %319 = vmatpush.msrb.mxu3 %v2123_v43  ;;  %281 = vmatpush.msrb.mxu2 %v2134_v47  ;;  %3048 = vst [vmem:[#allocation27_spill] sm:$0xff] %v2153_v54  ;;  %v2228_v27 = vld [vmem:[#allocation5 + $0xe8] sm:$0xff] }
  0x2b   :  { %243 = vmatpush.msra.mxu0 %v2126_v44  ;;  %3049 = vst [vmem:[#allocation28_spill] sm:$0xff] %v2158_v55  ;;  %v2234_v28 = vld [vmem:[#allocation5 + $0xc8] sm:$0xff] }
  0x2c   :  { %320 = vmatpush.msrb.mxu3 %v2137_v48  ;;  %282 = vmatpush.msrb.mxu2 %v2143_v50  ;;  %3050 = vst [vmem:[#allocation29_spill] sm:$0xff] %v2160_v56  ;;  %v2240_v45 = vld [vmem:[#allocation5 + $0xa8] sm:$0xff] }
  0x2d   :  { %244 = vmatpush.msra.mxu0 %v2132_v46  ;;  %3051 = vst [vmem:[#allocation30_spill] sm:$0xff] %v2165_v57  ;;  %v2246_v59 = vld [vmem:[#allocation5 + $0x88] sm:$0xff] }
  0x2e   :  { %321 = vmatpush.msrb.mxu3 %v2145_v51  ;;  %283 = vmatpush.msrb.mxu2 %v2151_v53  ;;  %3052 = vst [vmem:[#allocation31_spill] sm:$0xff] %v2167_v58 }
  0x2f   :  { %245 = vmatpush.msra.mxu0 %v2141_v49  ;;  %3053 = vst [vmem:[#allocation32_spill] sm:$0xff] %v2240_v45 }
  0x30   :  { %246 = vmatmul.f32.vlgmr.msra.gmra.mxu0 %v2911_v52  ;;  %322 = vmatpush.msrb.mxu3 %v2153_v54  ;;  %3054 = vst [vmem:[#allocation33_spill] sm:$0xff] %v2246_v59 }
  0x31   :  { %393 = vmatpush.msrb.mxu0 %v2024_v2  ;;  %284 = vmatpush.msrb.mxu2 %v2158_v55 }
  0x32   :  { %323 = vmatpush.msrb.mxu3 %v2160_v56 }
  0x33   :  { %394 = vmatpush.msrb.mxu0 %v2026_v3  ;;  %285 = vmatpush.msrb.mxu2 %v2165_v57 }
  0x34   :  { %324 = vmatpush.msrb.mxu3 %v2167_v58 }
  0x35   :  { %395 = vmatpush.msrb.mxu0 %v2029_v6 }
  0x37   :  { %396 = vmatpush.msrb.mxu0 %v2036_v11 }
  0x39   :  { %397 = vmatpush.msrb.mxu0 %v2045_v14 }
  0x3b   :  { %398 = vmatpush.msrb.mxu0 %v2054_v17 }
  0x3d   :  { %399 = vmatpush.msrb.mxu0 %v2063_v20 }
  0x3f   :  { %400 = vmatpush.msrb.mxu0 %v2072_v24 }
  0x41   :  { %401 = vmatpush.msrb.mxu0 %v2081_v29 }
  0x43   :  { %402 = vmatpush.msrb.mxu0 %v2090_v32 }
  0x45   :  { %403 = vmatpush.msrb.mxu0 %v2099_v35 }
  0x47   :  { %404 = vmatpush.msrb.mxu0 %v2108_v38 }
  0x49   :  { %405 = vmatpush.msrb.mxu0 %v2117_v41 }
  0x4b   :  { %406 = vmatpush.msrb.mxu0 %v2126_v44 }
  0x4d   :  { %407 = vmatpush.msrb.mxu0 %v2132_v46 }
  0x4f   :  { %408 = vmatpush.msrb.mxu0 %v2141_v49 }
  0x51   :  { %558 = vmatpush.msra.mxu0 %v2024_v2 }
  0x53   :  { %559 = vmatpush.msra.mxu0 %v2026_v3 }
  0x55   :  { %560 = vmatpush.msra.mxu0 %v2029_v6 }
  0x57   :  { %561 = vmatpush.msra.mxu0 %v2036_v11 }
  0x59   :  { %562 = vmatpush.msra.mxu0 %v2045_v14 }
  0x5b   :  { %563 = vmatpush.msra.mxu0 %v2054_v17 }
  0x5d   :  { %564 = vmatpush.msra.mxu0 %v2063_v20 }
  0x5f   :  { %565 = vmatpush.msra.mxu0 %v2072_v24 }
  0x61   :  { %566 = vmatpush.msra.mxu0 %v2081_v29  ;;  %v3059_v29 = vmov 0.0  }
  0x63   :  { %567 = vmatpush.msra.mxu0 %v2090_v32 }
  0x65   :  { %568 = vmatpush.msra.mxu0 %v2099_v35 }
  0x67   :  { %569 = vmatpush.msra.mxu0 %v2108_v38 }
  0x69   :  { %570 = vmatpush.msra.mxu0 %v2117_v41 }
  0x6b   :  { %571 = vmatpush.msra.mxu0 %v2126_v44 }
  0x6d   :  { %572 = vmatpush.msra.mxu0 %v2132_v46 }
  0x6f   :  { %573 = vmatpush.msra.mxu0 %v2141_v49 }
  0x83   :  { %v76_v61 = vpop.permute.xlu0 %75 }
  0x84   :  { %vm77_vm1 = vcmp.eq.s32.totalorder %v73_v60, %v76_v61  ;;  %v2252_v60 = vld [vmem:[#allocation5 + $0x68] sm:$0xff] }
  0x85   :  { %v1628_v63 = vsel %vm77_vm1, 1.0, %v2911_v52  ;;  %3055 = vst [vmem:[#allocation34_spill] sm:$0xff] %v2252_v60  ;;  %v2258_v61 = vld [vmem:[#allocation5 + $0x48] sm:$0xff] }
  0x86   :  { %1629 = vmatmul.msk.f32.vlgmr.msra.gmra.mxu1 %vm98_vm0, %v1628_v63  ;;  %1631 = vmatmul.msk.f32.vlgmr.msra.gmra.mxu2 %vm98_vm0, %v1628_v63  ;;  %3056 = vst [vmem:[#allocation35_spill] sm:$0xff] %v2258_v61 }
  0x87   :  { %1632 = vmatmul.msk.f32.vlgmr.msra.gmra.mxu3 %vm98_vm0, %v1628_v63  ;;  %250 = vmatpush.msra.mxu1 %v2182_v62 }
  0x88   :  { %433 = vmatpush.msra.mxu2 %v2032_v9  ;;  %465 = vmatpush.msra.mxu3 %v2034_v10 }
  0x89   :  { %251 = vmatpush.msra.mxu1 %v2188_v0 }
  0x8a   :  { %434 = vmatpush.msra.mxu2 %v2038_v12  ;;  %466 = vmatpush.msra.mxu3 %v2042_v13 }
  0x8b   :  { %252 = vmatpush.msra.mxu1 %v2192_v1 }
  0x8c   :  { %435 = vmatpush.msra.mxu2 %v2047_v15  ;;  %467 = vmatpush.msra.mxu3 %v2051_v16 }
  0x8d   :  { %253 = vmatpush.msra.mxu1 %v2198_v4 }
  0x8e   :  { %1630 = vmatmul.msk.f32.vlgmr.msrb.gmra.mxu1 %vm98_vm0, %v1628_v63  ;;  %286 = vmatmul.f32.vlgmr.msrb.gmra.mxu2 %v2911_v52  ;;  %v2264_v63 = vld [vmem:[#allocation5 + $0x28] sm:$0xff] }
  0x8f   :  { %254 = vmatpush.msra.mxu1 %v2204_v5  ;;  %325 = vmatmul.f32.vlgmr.msrb.gmra.mxu3 %v2911_v52  ;;  %3057 = vst [vmem:[#allocation36_spill] sm:$0xff] %v2264_v63  ;;  %v2270_v52 = vld [vmem:[#allocation5 + $0x8] sm:$0xff] }
  0x90   :  { %436 = vmatpush.msra.mxu2 %v2056_v18  ;;  %468 = vmatpush.msra.mxu3 %v2060_v19  ;;  %3058 = vst [vmem:[#allocation37_spill] sm:$0xff] %v2270_v52 }
  0x91   :  { %255 = vmatpush.msra.mxu1 %v2212_v7 }
  0x92   :  { %437 = vmatpush.msra.mxu2 %v2065_v21  ;;  %469 = vmatpush.msra.mxu3 %v2069_v22 }
  0x93   :  { %256 = vmatpush.msra.mxu1 %v2216_v8 }
  0x94   :  { %438 = vmatpush.msra.mxu2 %v2074_v25  ;;  %470 = vmatpush.msra.mxu3 %v2078_v26 }
  0x95   :  { %257 = vmatpush.msra.mxu1 %v2222_v23 }
  0x96   :  { %439 = vmatpush.msra.mxu2 %v2083_v30  ;;  %471 = vmatpush.msra.mxu3 %v2087_v31 }
  0x97   :  { %258 = vmatpush.msra.mxu1 %v2228_v27 }
  0x98   :  { %440 = vmatpush.msra.mxu2 %v2092_v33  ;;  %472 = vmatpush.msra.mxu3 %v2096_v34 }
  0x99   :  { %259 = vmatpush.msra.mxu1 %v2234_v28 }
  0x9a   :  { %441 = vmatpush.msra.mxu2 %v2101_v36  ;;  %473 = vmatpush.msra.mxu3 %v2105_v37 }
  0x9b   :  { %260 = vmatpush.msra.mxu1 %v2240_v45 }
  0x9c   :  { %442 = vmatpush.msra.mxu2 %v2110_v39  ;;  %474 = vmatpush.msra.mxu3 %v2114_v40 }
  0x9d   :  { %261 = vmatpush.msra.mxu1 %v2246_v59 }
  0x9e   :  { %443 = vmatpush.msra.mxu2 %v2119_v42  ;;  %475 = vmatpush.msra.mxu3 %v2123_v43 }
  0x9f   :  { %262 = vmatpush.msra.mxu1 %v2252_v60 }
  0xa0   :  { %444 = vmatpush.msra.mxu2 %v2134_v47  ;;  %476 = vmatpush.msra.mxu3 %v2137_v48 }
  0xa1   :  { %263 = vmatpush.msra.mxu1 %v2258_v61 }
  0xa2   :  { %445 = vmatpush.msra.mxu2 %v2143_v50  ;;  %477 = vmatpush.msra.mxu3 %v2145_v51 }
  0xa3   :  { %264 = vmatpush.msra.mxu1 %v2264_v63 }
  0xa4   :  { %446 = vmatpush.msra.mxu2 %v2151_v53  ;;  %478 = vmatpush.msra.mxu3 %v2153_v54 }
  0xa5   :  { %265 = vmatpush.msra.mxu1 %v2270_v52 }
  0xa6   :  { %266 = vmatmul.f32.vlgmr.msra.gmra.mxu1 %v3059_v29  ;;  %447 = vmatpush.msra.mxu2 %v2158_v55  ;;  %v88_v29 = vld [vmem:[%s2907_s3] sm:$0xf] }
  0xa7   :  { %413 = vmatpush.msrb.mxu1 %v2182_v62  ;;  %479 = vmatpush.msra.mxu3 %v2160_v56 }
  0xa8   :  { %448 = vmatpush.msra.mxu2 %v2165_v57 }
  0xa9   :  { %414 = vmatpush.msrb.mxu1 %v2188_v0  ;;  %480 = vmatpush.msra.mxu3 %v2167_v58 }
  0xaa   :  { %598 = vmatpush.msrb.mxu2 %v2032_v9 }
  0xab   :  { %630 = vmatpush.msrb.mxu3 %v2034_v10  ;;  %415 = vmatpush.msrb.mxu1 %v2192_v1 }
  0xac   :  { %599 = vmatpush.msrb.mxu2 %v2038_v12 }
  0xad   :  { %631 = vmatpush.msrb.mxu3 %v2042_v13  ;;  %416 = vmatpush.msrb.mxu1 %v2198_v4 }
  0xae   :  { %600 = vmatpush.msrb.mxu2 %v2047_v15 }
  0xaf   :  { %632 = vmatpush.msrb.mxu3 %v2051_v16  ;;  %417 = vmatpush.msrb.mxu1 %v2204_v5 }
  0xb0   :  { %601 = vmatpush.msrb.mxu2 %v2056_v18 }
  0xb1   :  { %633 = vmatpush.msrb.mxu3 %v2060_v19  ;;  %418 = vmatpush.msrb.mxu1 %v2212_v7 }
  0xb2   :  { %602 = vmatpush.msrb.mxu2 %v2065_v21 }
  0xb3   :  { %634 = vmatpush.msrb.mxu3 %v2069_v22  ;;  %419 = vmatpush.msrb.mxu1 %v2216_v8 }
  0xb4   :  { %603 = vmatpush.msrb.mxu2 %v2074_v25 }
  0xb5   :  { %635 = vmatpush.msrb.mxu3 %v2078_v26  ;;  %420 = vmatpush.msrb.mxu1 %v2222_v23 }
  0xb6   :  { %604 = vmatpush.msrb.mxu2 %v2083_v30 }
  0xb7   :  { %636 = vmatpush.msrb.mxu3 %v2087_v31  ;;  %421 = vmatpush.msrb.mxu1 %v2228_v27 }
  0xb8   :  { %605 = vmatpush.msrb.mxu2 %v2092_v33 }
  0xb9   :  { %637 = vmatpush.msrb.mxu3 %v2096_v34  ;;  %422 = vmatpush.msrb.mxu1 %v2234_v28 }
  0xba   :  { %606 = vmatpush.msrb.mxu2 %v2101_v36 }
  0xbb   :  { %638 = vmatpush.msrb.mxu3 %v2105_v37  ;;  %423 = vmatpush.msrb.mxu1 %v2240_v45 }
  0xbc   :  { %607 = vmatpush.msrb.mxu2 %v2110_v39 }
  0xbd   :  { %639 = vmatpush.msrb.mxu3 %v2114_v40  ;;  %424 = vmatpush.msrb.mxu1 %v2246_v59 }
  0xbe   :  { %608 = vmatpush.msrb.mxu2 %v2119_v42 }
  0xbf   :  { %640 = vmatpush.msrb.mxu3 %v2123_v43  ;;  %425 = vmatpush.msrb.mxu1 %v2252_v60 }
  0xc0   :  { %609 = vmatpush.msrb.mxu2 %v2134_v47 }
  0xc1   :  { %641 = vmatpush.msrb.mxu3 %v2137_v48  ;;  %426 = vmatpush.msrb.mxu1 %v2258_v61 }
  0xc2   :  { %610 = vmatpush.msrb.mxu2 %v2143_v50 }
  0xc3   :  { %642 = vmatpush.msrb.mxu3 %v2145_v51  ;;  %427 = vmatpush.msrb.mxu1 %v2264_v63 }
  0xc4   :  { %611 = vmatpush.msrb.mxu2 %v2151_v53  ;;  %v92_v53 = vperm.slane %v88_v29, 2 }
  0xc5   :  { %643 = vmatpush.msrb.mxu3 %v2153_v54  ;;  %428 = vmatpush.msrb.mxu1 %v2270_v52 }
  0xc6   :  { %612 = vmatpush.msrb.mxu2 %v2158_v55 }
  0xc7   :  { %578 = vmatpush.msra.mxu1 %v2182_v62  ;;  %644 = vmatpush.msrb.mxu3 %v2160_v56  ;;  %v247_v56 = vpop.f32.mrf.mxu0 }
  0xc8   :  { %613 = vmatpush.msrb.mxu2 %v2165_v57 }
  0xc9   :  { %579 = vmatpush.msra.mxu1 %v2188_v0  ;;  %645 = vmatpush.msrb.mxu3 %v2167_v58  ;;  %v90_v58 = vperm.slane %v88_v29, 0 }
  0xcb   :  { %580 = vmatpush.msra.mxu1 %v2192_v1 }
  0xcd   :  { %581 = vmatpush.msra.mxu1 %v2198_v4 }
  0xcf   :  { %582 = vmatpush.msra.mxu1 %v2204_v5 }
  0xd1   :  { %583 = vmatpush.msra.mxu1 %v2212_v7 }
  0xd3   :  { %584 = vmatpush.msra.mxu1 %v2216_v8 }
  0xd5   :  { %585 = vmatpush.msra.mxu1 %v2222_v23 }
  0xd7   :  { %586 = vmatpush.msra.mxu1 %v2228_v27 }
  0xd9   :  { %587 = vmatpush.msra.mxu1 %v2234_v28 }
  0xdb   :  { %588 = vmatpush.msra.mxu1 %v2240_v45 }
  0xdd   :  { %589 = vmatpush.msra.mxu1 %v2246_v59 }
  0xdf   :  { %590 = vmatpush.msra.mxu1 %v2252_v60  ;;  %v91_v60 = vperm.slane %v88_v29, 1 }
  0xe1   :  { %591 = vmatpush.msra.mxu1 %v2258_v61 }
  0xe3   :  { %592 = vmatpush.msra.mxu1 %v2264_v63 }
  0xe5   :  { %593 = vmatpush.msra.mxu1 %v2270_v52 }
 0x103   :  { %v119_v57 = vpop.f32.mrf.mxu1 }
 0x104   :  { %v2356_v49 = vadd.f32 %v119_v57, %v90_v58 }
 0x106   :  { %3060 = vst [vmem:[#allocation38_spill] sm:$0xff] %v2356_v49  ;;  %v290_v55 = vadd.f32 %v247_v56, %v2356_v49 }
 0x108   :  { %v1633_v54 = vmul.f32 -1.442695, %v290_v55 }
 0x109   :  { %v159_v46 = vpop.f32.mrf.mxu2 }
 0x10a   :  { %1669 = vpow2.f32 %v1633_v54  ;;  %v2359_v44 = vadd.f32 %v159_v46, %v92_v53  ;;  %v179_v46 = vpop.f32.mrf.mxu3 }
 0x10b   :  { %v139_v52 = vpop.f32.mrf.mxu1 }
 0x10c   :  { %3061 = vst [vmem:[#allocation39_spill] sm:$0xff] %v2359_v44  ;;  %v2362_v57 = vadd.f32 %v139_v52, %v91_v60 }
 0x10e   :  { %3062 = vst [vmem:[#allocation40_spill] sm:$0xff] %v2362_v57 }
 0x110   :  { %v1670_v63 = vpop.eup %1669 }
 0x111   :  { %v287_v61 = vpop.f32.mrf.mxu2  ;;  %v339_v50 = vadd.f32 1.0, %v1670_v63  ;;  %v93_v63 = vperm.slane %v88_v29, 3 }
 0x112   :  { %v292_v51 = vadd.f32 %v287_v61, %v2359_v44 }
 0x113   :  { %1671 = vrcp.f32 %v339_v50  ;;  %v2365_v60 = vadd.f32 %v179_v46, %v93_v63  ;;  %v353_v38 = vand.u32 2147483648, %v339_v50  ;;  %vm347_vm3 = vweird.f32 %v339_v50 }
 0x114   :  { %v1635_v41 = vmul.f32 -1.442695, %v292_v51  ;;  %v326_v51 = vpop.f32.mrf.mxu3 }
 0x115   :  { %3063 = vst [vmem:[#allocation41_spill] sm:$0xff] %v2365_v60  ;;  %v354_v63 = vor.u32 1.1754944e-38, %v353_v38 }
 0x116   :  { %1673 = vpow2.f32 %v1635_v41 }
 0x119   :  { %v1672_v54 = vpop.eup %1671 }
 0x11a   :  { %v343_v53 = vmul.f32 %v1672_v54, %v339_v50  ;;  %vm348_vm2 = vweird.f32 %v1672_v54 }
 0x11b   :  { %vm349_vm4 = vmor %vm347_vm3, %vm348_vm2 }
 0x11c   :  { %v1674_v49 = vpop.eup %1673  ;;  %v344_v61 = vsub.f32 1.0, %v343_v53 }
 0x11d   :  { %v341_v48 = vadd.f32 1.0, %v1674_v49  ;;  %v351_v49 = vand.u32 2147483647, %v339_v50 }
 0x11e   :  { %v345_v52 = vmul.f32 %v1672_v54, %v344_v61 }
 0x11f   :  { %vm352_vm6 = vcmp.eq.f32.partialorder %v351_v49, 8.507059e+37  ;;  %vm377_vm11 = vweird.f32 %v341_v48  ;;  %v381_v38 = vand.u32 2147483647, %v341_v48  ;;  %v3083_v49 = vld [vmem:[#allocation20_spill] sm:$0xff] }
 0x121   :  { %vm382_vm13 = vcmp.eq.f32.partialorder %v381_v38, 8.507059e+37  ;;  %v3092_v38 = vld [vmem:[#allocation40_spill] sm:$0xff] }
 0x123   :  { %v267_v58 = vpop.f32.mrf.mxu1 }
 0x124   :  { %v291_v56 = vadd.f32 %v267_v58, %v2362_v57  ;;  %v329_v58 = vadd.f32 %v326_v51, %v2365_v60 }
 0x126   :  { %v1634_v55 = vmul.f32 -1.442695, %v291_v56  ;;  %v346_v56 = vadd.f32 %v1672_v54, %v345_v52 }
 0x128   :  { %1675 = vpow2.f32 %v1634_v55  ;;  %v350_v53 = vsel %vm349_vm4, %v1672_v54, %v346_v56  ;;  %v383_v56 = vand.u32 2147483648, %v341_v48 }
 0x129   :  { %1677 = vrcp.f32 %v341_v48  ;;  %v355_v51 = vsel %vm352_vm6, %v354_v63, %v350_v53  ;;  %v3086_v53 = vld [vmem:[#allocation29_spill] sm:$0xff]  ;;  %v3089_v63 = vld [vmem:[#allocation30_spill] sm:$0xff] }
 0x12e   :  { %v1676_v47 = vpop.eup %1675 }
 0x12f   :  { %v340_v59 = vadd.f32 1.0, %v1676_v47  ;;  %v1678_v41 = vpop.eup %1677 }
 0x130   :  { %v373_v57 = vmul.f32 %v1678_v41, %v341_v48  ;;  %vm378_vm10 = vweird.f32 %v1678_v41  ;;  %v3079_v48 = vld [vmem:[#allocation19_spill] sm:$0xff] }
 0x131   :  { %1679 = vrcp.f32 %v340_v59  ;;  %v368_v29 = vand.u32 2147483648, %v340_v59  ;;  %v366_v46 = vand.u32 2147483647, %v340_v59  ;;  %vm362_vm7 = vweird.f32 %v340_v59  ;;  %vm379_vm12 = vmor %vm377_vm11, %vm378_vm10 }
 0x132   :  { %1681 = vtanh.f32 %v329_v58  ;;  %v374_v61 = vsub.f32 1.0, %v373_v57 }
 0x133   :  { %v369_v52 = vor.u32 1.1754944e-38, %v368_v29  ;;  %vm367_vm9 = vcmp.eq.f32.partialorder %v366_v46, 8.507059e+37  ;;  %v3085_v29 = vld [vmem:[#allocation28_spill] sm:$0xff]  ;;  %v3087_v46 = vld [vmem:[#allocation23_spill] sm:$0xff] }
 0x134   :  { %v375_v50 = vmul.f32 %v1678_v41, %v374_v61  ;;  %v3088_v61 = vld [vmem:[#allocation37_spill] sm:$0xff] }
 0x136   :  { %v376_v54 = vadd.f32 %v1678_v41, %v375_v50 }
 0x137   :  { %v1680_v44 = vpop.eup %1679 }
 0x138   :  { %v358_v55 = vmul.f32 %v1680_v44, %v340_v59  ;;  %vm363_vm5 = vweird.f32 %v1680_v44  ;;  %v1682_v45 = vpop.eup %1681  ;;  %v384_v59 = vor.u32 1.1754944e-38, %v383_v56 }
 0x139   :  { %vm364_vm8 = vmor %vm362_vm7, %vm363_vm5  ;;  %v389_v35 = vmul.f32 %v1682_v45, %v355_v51  ;;  %v3080_v45 = vld [vmem:[#allocation35_spill] sm:$0xff] }
 0x13a   :  { %v359_v47 = vsub.f32 1.0, %v358_v55  ;;  %v3090_v51 = vld [vmem:[#allocation31_spill] sm:$0xff] }
 0x13c   :  { %v360_v43 = vmul.f32 %v1680_v44, %v359_v47  ;;  %v3084_v47 = vld [vmem:[#allocation36_spill] sm:$0xff] }
 0x13e   :  { %v361_v42 = vadd.f32 %v1680_v44, %v360_v43  ;;  %v380_v43 = vsel %vm379_vm12, %v1678_v41, %v376_v54  ;;  %v3082_v41 = vld [vmem:[#allocation27_spill] sm:$0xff]  ;;  %v3091_v54 = vld [vmem:[#allocation38_spill] sm:$0xff] }
 0x140   :  { %v365_v60 = vsel %vm364_vm8, %v1680_v44, %v361_v42  ;;  %v385_v44 = vsel %vm382_vm13, %v384_v59, %v380_v43 }
 0x141   :  { %v370_v55 = vsel %vm367_vm9, %v369_v52, %v365_v60  ;;  %v3081_v60 = vld [vmem:[#allocation26_spill] sm:$0xff] }
 0x142   :  { %v388_v58 = vmul.f32 0.0, %v370_v55 }
 0x144   :  { %v2368_v40 = vadd.f32 %v389_v35, %v388_v58  ;;  %v3078_v35 = vld [vmem:[#allocation25_spill] sm:$0xff] }
 0x146   :  { %1683 = vtanh.f32 %v2368_v40 }
 0x14c   :  { %v1684_v42 = vpop.eup %1683 }
 0x14d   :  { %v2371_v57 = vmul.f32 %v1684_v42, %v385_v44 }
 0x14f   :  { %3064 = vst [vmem:[#allocation42_spill] sm:$0xff] %v2371_v57  ;;  %409 = vmatmul.f32.vlgmr.msrb.gmra.mxu0 %v2371_v57  ;;  %429 = vmatmul.f32.vlgmr.msrb.gmra.mxu1 %v2371_v57 }
 0x150   :  { %449 = vmatmul.f32.vlgmr.msra.gmra.mxu2 %v2371_v57  ;;  %481 = vmatmul.f32.vlgmr.msra.gmra.mxu3 %v2371_v57 }
 0x151   :  { %723 = vmatpush.msrb.mxu0 %v2024_v2  ;;  %743 = vmatpush.msrb.mxu1 %v2182_v62  ;;  %v3065_v2 = vld [vmem:[#allocation12_spill] sm:$0xff] }
 0x152   :  { %763 = vmatpush.msra.mxu2 %v2032_v9  ;;  %795 = vmatpush.msra.mxu3 %v2034_v10  ;;  %v3068_v9 = vld [vmem:[#allocation32_spill] sm:$0xff]  ;;  %v3069_v10 = vld [vmem:[#allocation17_spill] sm:$0xff] }
 0x153   :  { %724 = vmatpush.msrb.mxu0 %v2026_v3  ;;  %744 = vmatpush.msrb.mxu1 %v2188_v0  ;;  %v3066_v3 = vld [vmem:[#allocation15_spill] sm:$0xff] }
 0x154   :  { %764 = vmatpush.msra.mxu2 %v2038_v12  ;;  %796 = vmatpush.msra.mxu3 %v2042_v13  ;;  %v3071_v12 = vld [vmem:[#allocation14_spill] sm:$0xff]  ;;  %v3072_v13 = vld [vmem:[#allocation33_spill] sm:$0xff] }
 0x155   :  { %725 = vmatpush.msrb.mxu0 %v2029_v6  ;;  %745 = vmatpush.msrb.mxu1 %v2192_v1  ;;  %v3067_v6 = vld [vmem:[#allocation13_spill] sm:$0xff] }
 0x156   :  { %765 = vmatpush.msra.mxu2 %v2047_v15  ;;  %797 = vmatpush.msra.mxu3 %v2051_v16  ;;  %v3074_v15 = vld [vmem:[#allocation22_spill] sm:$0xff] }
 0x157   :  { %726 = vmatpush.msrb.mxu0 %v2036_v11  ;;  %746 = vmatpush.msrb.mxu1 %v2198_v4  ;;  %v3070_v11 = vld [vmem:[#allocation18_spill] sm:$0xff] }
 0x158   :  { %766 = vmatpush.msra.mxu2 %v2056_v18  ;;  %798 = vmatpush.msra.mxu3 %v2060_v19 }
 0x159   :  { %727 = vmatpush.msrb.mxu0 %v2045_v14  ;;  %747 = vmatpush.msrb.mxu1 %v2204_v5  ;;  %v3073_v14 = vld [vmem:[#allocation21_spill] sm:$0xff] }
 0x15a   :  { %767 = vmatpush.msra.mxu2 %v2065_v21  ;;  %799 = vmatpush.msra.mxu3 %v2069_v22 }
 0x15b   :  { %728 = vmatpush.msrb.mxu0 %v2054_v17  ;;  %748 = vmatpush.msrb.mxu1 %v2212_v7  ;;  %v3075_v17 = vld [vmem:[#allocation16_spill] sm:$0xff] }
 0x15c   :  { %768 = vmatpush.msra.mxu2 %v2074_v25  ;;  %800 = vmatpush.msra.mxu3 %v2078_v26 }
 0x15d   :  { %729 = vmatpush.msrb.mxu0 %v2063_v20  ;;  %749 = vmatpush.msrb.mxu1 %v2216_v8  ;;  %v3076_v20 = vld [vmem:[#allocation34_spill] sm:$0xff] }
 0x15e   :  { %769 = vmatpush.msra.mxu2 %v2083_v30  ;;  %801 = vmatpush.msra.mxu3 %v2087_v31 }
 0x15f   :  { %730 = vmatpush.msrb.mxu0 %v2072_v24  ;;  %750 = vmatpush.msrb.mxu1 %v2222_v23  ;;  %v3077_v24 = vld [vmem:[#allocation24_spill] sm:$0xff] }
 0x160   :  { %770 = vmatpush.msra.mxu2 %v2092_v33  ;;  %802 = vmatpush.msra.mxu3 %v2096_v34 }
 0x161   :  { %731 = vmatpush.msrb.mxu0 %v3065_v2  ;;  %751 = vmatpush.msrb.mxu1 %v2228_v27 }
 0x162   :  { %771 = vmatpush.msra.mxu2 %v2101_v36  ;;  %803 = vmatpush.msra.mxu3 %v2105_v37 }
 0x163   :  { %732 = vmatpush.msrb.mxu0 %v2090_v32  ;;  %752 = vmatpush.msrb.mxu1 %v2234_v28 }
 0x164   :  { %772 = vmatpush.msra.mxu2 %v2110_v39  ;;  %804 = vmatpush.msra.mxu3 %v3066_v3 }
 0x165   :  { %733 = vmatpush.msrb.mxu0 %v3067_v6  ;;  %753 = vmatpush.msrb.mxu1 %v3068_v9 }
 0x166   :  { %773 = vmatpush.msra.mxu2 %v3069_v10  ;;  %805 = vmatpush.msra.mxu3 %v3070_v11 }
 0x167   :  { %734 = vmatpush.msrb.mxu0 %v3071_v12  ;;  %754 = vmatpush.msrb.mxu1 %v3072_v13 }
 0x168   :  { %774 = vmatpush.msra.mxu2 %v3073_v14  ;;  %806 = vmatpush.msra.mxu3 %v3074_v15 }
 0x169   :  { %735 = vmatpush.msrb.mxu0 %v3075_v17  ;;  %755 = vmatpush.msrb.mxu1 %v3076_v20 }
 0x16a   :  { %775 = vmatpush.msra.mxu2 %v3077_v24  ;;  %807 = vmatpush.msra.mxu3 %v3078_v35 }
 0x16b   :  { %736 = vmatpush.msrb.mxu0 %v3079_v48  ;;  %756 = vmatpush.msrb.mxu1 %v3080_v45 }
 0x16c   :  { %776 = vmatpush.msra.mxu2 %v3081_v60  ;;  %808 = vmatpush.msra.mxu3 %v3082_v41 }
 0x16d   :  { %737 = vmatpush.msrb.mxu0 %v3083_v49  ;;  %757 = vmatpush.msrb.mxu1 %v3084_v47 }
 0x16e   :  { %777 = vmatpush.msra.mxu2 %v3085_v29  ;;  %809 = vmatpush.msra.mxu3 %v3086_v53 }
 0x16f   :  { %738 = vmatpush.msrb.mxu0 %v3087_v46  ;;  %758 = vmatpush.msrb.mxu1 %v3088_v61  ;;  %v3093_v46 = vld [vmem:[#allocation39_spill] sm:$0xff] }
 0x170   :  { %778 = vmatpush.msra.mxu2 %v3089_v63  ;;  %810 = vmatpush.msra.mxu3 %v3090_v51 }
 0x1cc   :  { %v410_v52 = vpop.f32.mrf.mxu0  ;;  %v430_v50 = vpop.f32.mrf.mxu1 }
 0x1cd   :  { %v456_v55 = vrot.slane %v410_v52, 7  ;;  %v457_v58 = vrot.slane %v430_v50, 7 }
 0x1cf   :  { %v462_v56 = vadd.f32 %v456_v55, %v3091_v54  ;;  %v463_v43 = vadd.f32 %v457_v58, %v3092_v38 }
 0x1d1   :  { %v1636_v59 = vmul.f32 -1.442695, %v462_v56  ;;  %v1637_v42 = vmul.f32 -1.442695, %v463_v43  ;;  %v3094_v43 = vld [vmem:[#allocation41_spill] sm:$0xff] }
 0x1d3   :  { %1685 = vpow2.f32 %v1636_v59  ;;  %v450_v44 = vpop.f32.mrf.mxu2  ;;  %v482_v52 = vpop.f32.mrf.mxu3 }
 0x1d4   :  { %1687 = vpow2.f32 %v1637_v42  ;;  %v458_v57 = vrot.slane %v450_v44, 7  ;;  %v486_v50 = vrot.slane %v482_v52, 7 }
 0x1d6   :  { %v464_v61 = vadd.f32 %v458_v57, %v3093_v46  ;;  %v488_v59 = vadd.f32 %v486_v50, %v3094_v43 }
 0x1d8   :  { %v1638_v53 = vmul.f32 -1.442695, %v464_v61 }
 0x1d9   :  { %v1686_v63 = vpop.eup %1685 }
 0x1da   :  { %v1688_v29 = vpop.eup %1687  ;;  %v498_v51 = vadd.f32 1.0, %v1686_v63  ;;  %1689 = vpow2.f32 %v1638_v53 }
 0x1db   :  { %v499_v47 = vadd.f32 1.0, %v1688_v29 }
 0x1dc   :  { %1691 = vrcp.f32 %v498_v51  ;;  %v512_v46 = vand.u32 2147483648, %v498_v51  ;;  %v510_v29 = vand.u32 2147483647, %v498_v51  ;;  %vm506_vm0 = vweird.f32 %v498_v51 }
 0x1dd   :  { %1693 = vrcp.f32 %v499_v47  ;;  %v527_v63 = vand.u32 2147483648, %v499_v47  ;;  %v525_v52 = vand.u32 2147483647, %v499_v47  ;;  %vm521_vm1 = vweird.f32 %v499_v47 }
 0x1de   :  { %v513_v43 = vor.u32 1.1754944e-38, %v512_v46  ;;  %vm511_vm4 = vcmp.eq.f32.partialorder %v510_v29, 8.507059e+37  ;;  %v2486_v29 = vld [vmem:[#allocation5 + $0x160] sm:$0xff] }
 0x1df   :  { %vm526_vm5 = vcmp.eq.f32.partialorder %v525_v52, 8.507059e+37 }
 0x1e0   :  { %v1690_v55 = vpop.eup %1689 }
 0x1e1   :  { %v500_v58 = vadd.f32 1.0, %v1690_v55 }
 0x1e2   :  { %v1692_v56 = vpop.eup %1691 }
 0x1e3   :  { %v1694_v38 = vpop.eup %1693  ;;  %v502_v42 = vmul.f32 %v1692_v56, %v498_v51  ;;  %1695 = vrcp.f32 %v500_v58  ;;  %vm507_vm14 = vweird.f32 %v1692_v56  ;;  %v542_v46 = vand.u32 2147483648, %v500_v58 }
 0x1e4   :  { %v517_v44 = vmul.f32 %v1694_v38, %v499_v47  ;;  %1697 = vtanh.f32 %v488_v59  ;;  %vm522_vm15 = vweird.f32 %v1694_v38  ;;  %vm508_vm2 = vmor %vm506_vm0, %vm507_vm14  ;;  %v548_v59 = vrot.slane %v2368_v40, 7 }
 0x1e5   :  { %v503_v57 = vsub.f32 1.0, %v502_v42  ;;  %vm523_vm3 = vmor %vm521_vm1, %vm522_vm15  ;;  %v528_v42 = vor.u32 1.1754944e-38, %v527_v63  ;;  %vm536_vm7 = vweird.f32 %v500_v58  ;;  %v2476_v63 = vld [vmem:[#allocation5 + $0x1b0] sm:$0xff] }
 0x1e6   :  { %v518_v61 = vsub.f32 1.0, %v517_v44 }
 0x1e7   :  { %v504_v53 = vmul.f32 %v1692_v56, %v503_v57 }
 0x1e8   :  { %v519_v54 = vmul.f32 %v1694_v38, %v518_v61 }
 0x1e9   :  { %v1696_v49 = vpop.eup %1695  ;;  %v505_v55 = vadd.f32 %v1692_v56, %v504_v53 }
 0x1ea   :  { %v532_v50 = vmul.f32 %v1696_v49, %v500_v58  ;;  %v520_v41 = vadd.f32 %v1694_v38, %v519_v54  ;;  %v1698_v57 = vpop.eup %1697  ;;  %vm537_vm6 = vweird.f32 %v1696_v49  ;;  %v540_v54 = vand.u32 2147483647, %v500_v58  ;;  %v2469_v58 = vld [vmem:[#allocation5 + $0x1d8] sm:$0xff] }
 0x1eb   :  { %v509_v44 = vsel %vm508_vm2, %v1692_v56, %v505_v55  ;;  %vm538_vm8 = vmor %vm536_vm7, %vm537_vm6  ;;  %v543_v56 = vor.u32 1.1754944e-38, %v542_v46  ;;  %vm1547_vm7 = vcmask 1041408  }
 0x1ec   :  { %v533_v60 = vsub.f32 1.0, %v532_v50  ;;  %v514_v45 = vsel %vm511_vm4, %v513_v43, %v509_v44  ;;  %v524_v61 = vsel %vm523_vm3, %v1694_v38, %v520_v41  ;;  %vm541_vm9 = vcmp.eq.f32.partialorder %v540_v54, 8.507059e+37 }
 0x1ed   :  { %v529_v48 = vsel %vm526_vm5, %v528_v42, %v524_v61  ;;  %v551_v35 = vmul.f32 %v1698_v57, %v514_v45  ;;  %v2456_v45 = vld [vmem:[#allocation5 + $0x1f0] sm:$0xff]  ;;  %vm1545_vm5 = vcmask 1040384  }
 0x1ee   :  { %v550_v53 = vmul.f32 %v548_v59, %v529_v48  ;;  %v534_v51 = vmul.f32 %v1696_v49, %v533_v60  ;;  %v2462_v60 = vld [vmem:[#allocation5 + $0x1c0] sm:$0xff]  ;;  %v3112_v57 = vld [vmem:[#allocation41_spill] sm:$0xff] }
 0x1f0   :  { %v2446_v47 = vadd.f32 %v551_v35, %v550_v53  ;;  %v535_v24 = vadd.f32 %v1696_v49, %v534_v51  ;;  %v2452_v35 = vld [vmem:[#allocation5 + $0x1e0] sm:$0xff] }
 0x1f2   :  { %1699 = vtanh.f32 %v2446_v47  ;;  %v539_v40 = vsel %vm538_vm8, %v1696_v49, %v535_v24  ;;  %v2459_v24 = vld [vmem:[#allocation5 + $0x1f8] sm:$0xff]  ;;  %v2466_v49 = vld [vmem:[#allocation5 + $0x1d0] sm:$0xff] }
 0x1f3   :  { %v544_v41 = vsel %vm541_vm9, %v543_v56, %v539_v40 }
 0x1f8   :  { %v1700_v43 = vpop.eup %1699 }
 0x1f9   :  { %v2449_v38 = vmul.f32 %v1700_v43, %v544_v41 }
 0x1fb   :  { %v556_v48 = vrot.slane %v2449_v38, 1 }
 0x1fd   :  { %574 = vmatmul.f32.vlgmr.msra.gmra.mxu0 %v556_v48  ;;  %594 = vmatmul.f32.vlgmr.msra.gmra.mxu1 %v556_v48 }
 0x1fe   :  { %614 = vmatmul.f32.vlgmr.msrb.gmra.mxu2 %v556_v48  ;;  %646 = vmatmul.f32.vlgmr.msrb.gmra.mxu3 %v556_v48 }
 0x1ff   :  { %888 = vmatpush.msra.mxu0 %v2452_v35  ;;  %908 = vmatpush.msra.mxu1 %v2182_v62  ;;  %v2472_v62 = vld [vmem:[#allocation5 + $0x1a0] sm:$0xff] }
 0x200   :  { %928 = vmatpush.msrb.mxu2 %v2456_v45  ;;  %960 = vmatpush.msrb.mxu3 %v2459_v24 }
 0x201   :  { %889 = vmatpush.msra.mxu0 %v2462_v60  ;;  %909 = vmatpush.msra.mxu1 %v2188_v0  ;;  %v2480_v0 = vld [vmem:[#allocation5 + $0x180] sm:$0xff] }
 0x202   :  { %929 = vmatpush.msrb.mxu2 %v2466_v49  ;;  %961 = vmatpush.msrb.mxu3 %v2469_v58 }
 0x203   :  { %890 = vmatpush.msra.mxu0 %v2472_v62  ;;  %910 = vmatpush.msra.mxu1 %v2192_v1  ;;  %v3107_v1 = vld [vmem:[#allocation30_spill] sm:$0xff] }
 0x204   :  { %930 = vmatpush.msrb.mxu2 %v2476_v63  ;;  %962 = vmatpush.msrb.mxu3 %v2051_v16  ;;  %v2492_v16 = vld [vmem:[#allocation5 + $0x140] sm:$0xff] }
 0x205   :  { %891 = vmatpush.msra.mxu0 %v2480_v0  ;;  %911 = vmatpush.msra.mxu1 %v2198_v4  ;;  %v3108_v4 = vld [vmem:[#allocation31_spill] sm:$0xff] }
 0x206   :  { %931 = vmatpush.msrb.mxu2 %v2056_v18  ;;  %963 = vmatpush.msrb.mxu3 %v2060_v19  ;;  %v2498_v18 = vld [vmem:[#allocation5 + $0x120] sm:$0xff] }
 0x207   :  { %892 = vmatpush.msra.mxu0 %v2486_v29  ;;  %912 = vmatpush.msra.mxu1 %v2204_v5  ;;  %v2504_v19 = vld [vmem:[#allocation5 + $0x100] sm:$0xff] }
 0x208   :  { %932 = vmatpush.msrb.mxu2 %v2065_v21  ;;  %964 = vmatpush.msrb.mxu3 %v2069_v22  ;;  %v3095_v21 = vld [vmem:[#allocation24_spill] sm:$0xff]  ;;  %v3096_v22 = vld [vmem:[#allocation25_spill] sm:$0xff] }
 0x209   :  { %893 = vmatpush.msra.mxu0 %v2492_v16  ;;  %913 = vmatpush.msra.mxu1 %v2212_v7 }
 0x20a   :  { %933 = vmatpush.msrb.mxu2 %v2074_v25  ;;  %965 = vmatpush.msrb.mxu3 %v2078_v26  ;;  %v3097_v25 = vld [vmem:[#allocation19_spill] sm:$0xff] }
 0x20b   :  { %894 = vmatpush.msra.mxu0 %v2498_v18  ;;  %914 = vmatpush.msra.mxu1 %v2216_v8  ;;  %v3098_v26 = vld [vmem:[#allocation35_spill] sm:$0xff] }
 0x20c   :  { %934 = vmatpush.msrb.mxu2 %v2083_v30  ;;  %966 = vmatpush.msrb.mxu3 %v2087_v31  ;;  %v3099_v30 = vld [vmem:[#allocation26_spill] sm:$0xff]  ;;  %v3100_v31 = vld [vmem:[#allocation27_spill] sm:$0xff] }
 0x20d   :  { %895 = vmatpush.msra.mxu0 %v2504_v19  ;;  %915 = vmatpush.msra.mxu1 %v2222_v23 }
 0x20e   :  { %935 = vmatpush.msrb.mxu2 %v2092_v33  ;;  %967 = vmatpush.msrb.mxu3 %v2096_v34  ;;  %v3102_v33 = vld [vmem:[#allocation36_spill] sm:$0xff] }
 0x20f   :  { %896 = vmatpush.msra.mxu0 %v3065_v2  ;;  %916 = vmatpush.msra.mxu1 %v2228_v27  ;;  %v3103_v34 = vld [vmem:[#allocation28_spill] sm:$0xff]  ;;  %v3109_v27 = vld [vmem:[#allocation38_spill] sm:$0xff] }
 0x210   :  { %936 = vmatpush.msrb.mxu2 %v2101_v36  ;;  %968 = vmatpush.msrb.mxu3 %v2105_v37  ;;  %v3104_v36 = vld [vmem:[#allocation29_spill] sm:$0xff]  ;;  %v3105_v37 = vld [vmem:[#allocation23_spill] sm:$0xff]  ;;  %v3110_v2 = vld [vmem:[#allocation40_spill] sm:$0xff] }
 0x211   :  { %897 = vmatpush.msra.mxu0 %v2090_v32  ;;  %917 = vmatpush.msra.mxu1 %v2234_v28  ;;  %v3101_v32 = vld [vmem:[#allocation20_spill] sm:$0xff] }
 0x212   :  { %937 = vmatpush.msrb.mxu2 %v2110_v39  ;;  %969 = vmatpush.msrb.mxu3 %v3066_v3  ;;  %v3106_v39 = vld [vmem:[#allocation37_spill] sm:$0xff] }
 0x213   :  { %898 = vmatpush.msra.mxu0 %v3067_v6  ;;  %918 = vmatpush.msra.mxu1 %v3068_v9 }
 0x214   :  { %938 = vmatpush.msrb.mxu2 %v3069_v10  ;;  %970 = vmatpush.msrb.mxu3 %v3070_v11 }
 0x215   :  { %899 = vmatpush.msra.mxu0 %v3071_v12  ;;  %919 = vmatpush.msra.mxu1 %v3072_v13  ;;  %v3111_v12 = vld [vmem:[#allocation39_spill] sm:$0xff] }
 0x216   :  { %939 = vmatpush.msrb.mxu2 %v3073_v14  ;;  %971 = vmatpush.msrb.mxu3 %v3074_v15 }
 0x217   :  { %900 = vmatpush.msra.mxu0 %v3075_v17  ;;  %920 = vmatpush.msra.mxu1 %v3076_v20 }
 0x218   :  { %940 = vmatpush.msrb.mxu2 %v3095_v21  ;;  %972 = vmatpush.msrb.mxu3 %v3096_v22 }
 0x219   :  { %901 = vmatpush.msra.mxu0 %v3097_v25  ;;  %921 = vmatpush.msra.mxu1 %v3098_v26 }
 0x21a   :  { %941 = vmatpush.msrb.mxu2 %v3099_v30  ;;  %973 = vmatpush.msrb.mxu3 %v3100_v31 }
 0x21b   :  { %902 = vmatpush.msra.mxu0 %v3101_v32  ;;  %922 = vmatpush.msra.mxu1 %v3102_v33  ;;  %v713_v33 = vrot.slane %v2446_v47, 7 }
 0x21c   :  { %942 = vmatpush.msrb.mxu2 %v3103_v34  ;;  %974 = vmatpush.msrb.mxu3 %v3104_v36 }
 0x21d   :  { %903 = vmatpush.msra.mxu0 %v3105_v37  ;;  %923 = vmatpush.msra.mxu1 %v3106_v39 }
 0x21e   :  { %943 = vmatpush.msrb.mxu2 %v3107_v1  ;;  %975 = vmatpush.msrb.mxu3 %v3108_v4 }
 0x27a   :  { %v575_v5 = vpop.f32.mrf.mxu0  ;;  %v595_v7 = vpop.f32.mrf.mxu1 }
 0x27b   :  { %v621_v8 = vrot.slane %v575_v5, 6  ;;  %v622_v23 = vrot.slane %v595_v7, 6 }
 0x27d   :  { %v627_v28 = vadd.f32 %v621_v8, %v3109_v27  ;;  %v628_v3 = vadd.f32 %v622_v23, %v3110_v2 }
 0x27f   :  { %v1639_v6 = vmul.f32 -1.442695, %v627_v28  ;;  %v1640_v9 = vmul.f32 -1.442695, %v628_v3 }
 0x281   :  { %1701 = vpow2.f32 %v1639_v6  ;;  %v615_v10 = vpop.f32.mrf.mxu2  ;;  %v647_v55 = vpop.f32.mrf.mxu3 }
 0x282   :  { %1703 = vpow2.f32 %v1640_v9  ;;  %v623_v11 = vrot.slane %v615_v10, 6  ;;  %v651_v50 = vrot.slane %v647_v55, 6  ;;  %v2555_v55 = vld [vmem:[#allocation5 + $0x1e8] sm:$0xff] }
 0x284   :  { %v629_v13 = vadd.f32 %v623_v11, %v3111_v12  ;;  %v653_v61 = vadd.f32 %v651_v50, %v3112_v57  ;;  %v2567_v50 = vld [vmem:[#allocation5 + $0x1a8] sm:$0xff] }
 0x286   :  { %v1641_v14 = vmul.f32 -1.442695, %v629_v13 }
 0x287   :  { %v1702_v15 = vpop.eup %1701 }
 0x288   :  { %v1704_v17 = vpop.eup %1703  ;;  %v663_v20 = vadd.f32 1.0, %v1702_v15  ;;  %1705 = vpow2.f32 %v1641_v14  ;;  %v3113_v15 = vld [vmem:[#allocation42_spill] sm:$0xff] }
 0x289   :  { %v664_v52 = vadd.f32 1.0, %v1704_v17  ;;  %v1546_v17 = vsel %vm1545_vm5, %v3113_v15, %v2449_v38  ;;  %v2561_v38 = vld [vmem:[#allocation5 + $0x1c8] sm:$0xff]  ;;  %v2693_v15 = vld [vmem:[#allocation5 + $0x58] sm:$0xff] }
 0x28a   :  { %1707 = vrcp.f32 %v663_v20  ;;  %v677_v56 = vand.u32 2147483648, %v663_v20  ;;  %v675_v48 = vand.u32 2147483647, %v663_v20  ;;  %vm671_vm12 = vweird.f32 %v663_v20  ;;  %3133 = vst [vmem:[#allocation36_spill] sm:$0xff] %v2693_v15 }
 0x28b   :  { %1709 = vrcp.f32 %v664_v52  ;;  %v692_v43 = vand.u32 2147483648, %v664_v52  ;;  %v690_v22 = vand.u32 2147483647, %v664_v52  ;;  %vm686_vm13 = vweird.f32 %v664_v52 }
 0x28c   :  { %v678_v31 = vor.u32 1.1754944e-38, %v677_v56  ;;  %vm676_vm0 = vcmp.eq.f32.partialorder %v675_v48, 8.507059e+37  ;;  %v2601_v56 = vld [vmem:[#allocation5 + $0x158] sm:$0xff] }
 0x28d   :  { %v693_v34 = vor.u32 1.1754944e-38, %v692_v43  ;;  %vm691_vm1 = vcmp.eq.f32.partialorder %v690_v22, 8.507059e+37  ;;  %v2605_v43 = vld [vmem:[#allocation5 + $0x128] sm:$0xff]  ;;  %v2611_v48 = vld [vmem:[#allocation5 + $0x138] sm:$0xff]  ;;  %v2618_v22 = vld [vmem:[#allocation5 + $0x110] sm:$0xff] }
 0x28e   :  { %v1706_v42 = vpop.eup %1705 }
 0x28f   :  { %v665_v44 = vadd.f32 1.0, %v1706_v42  ;;  %v2571_v42 = vld [vmem:[#allocation5 + $0x1b8] sm:$0xff] }
 0x290   :  { %v1708_v59 = vpop.eup %1707 }
 0x291   :  { %v1710_v53 = vpop.eup %1709  ;;  %v667_v51 = vmul.f32 %v1708_v59, %v663_v20  ;;  %1711 = vrcp.f32 %v665_v44  ;;  %vm672_vm10 = vweird.f32 %v1708_v59  ;;  %v707_v47 = vand.u32 2147483648, %v665_v44 }
 0x292   :  { %v682_v46 = vmul.f32 %v1710_v53, %v664_v52  ;;  %1713 = vtanh.f32 %v653_v61  ;;  %vm687_vm11 = vweird.f32 %v1710_v53  ;;  %vm673_vm14 = vmor %vm671_vm12, %vm672_vm10  ;;  %vm701_vm3 = vweird.f32 %v665_v44  ;;  %v2581_v61 = vld [vmem:[#allocation5 + $0x198] sm:$0xff] }
 0x293   :  { %v668_v54 = vsub.f32 1.0, %v667_v51  ;;  %vm688_vm15 = vmor %vm686_vm13, %vm687_vm11  ;;  %v705_v6 = vand.u32 2147483647, %v665_v44  ;;  %v708_v10 = vor.u32 1.1754944e-38, %v707_v47  ;;  %v2588_v51 = vld [vmem:[#allocation5 + $0x170] sm:$0xff]  ;;  %v2672_v47 = vld [vmem:[#allocation5 + $0x60] sm:$0xff] }
 0x294   :  { %v683_v40 = vsub.f32 1.0, %v682_v46  ;;  %v2591_v46 = vld [vmem:[#allocation5 + $0x178] sm:$0xff]  ;;  %3126 = vst [vmem:[#allocation24_spill] sm:$0xff] %v2672_v47 }
 0x295   :  { %v669_v41 = vmul.f32 %v1708_v59, %v668_v54  ;;  %vm706_vm6 = vcmp.eq.f32.partialorder %v705_v6, 8.507059e+37  ;;  %v2595_v54 = vld [vmem:[#allocation5 + $0x148] sm:$0xff] }
 0x296   :  { %v684_v21 = vmul.f32 %v1710_v53, %v683_v40  ;;  %v2598_v40 = vld [vmem:[#allocation5 + $0x150] sm:$0xff]  ;;  %v2675_v6 = vld [vmem:[#allocation5 + $0x68] sm:$0xff] }
 0x297   :  { %v1712_v25 = vpop.eup %1711  ;;  %v670_v26 = vadd.f32 %v1708_v59, %v669_v41  ;;  %v2608_v41 = vld [vmem:[#allocation5 + $0x130] sm:$0xff]  ;;  %3127 = vst [vmem:[#allocation25_spill] sm:$0xff] %v2675_v6 }
 0x298   :  { %v697_v30 = vmul.f32 %v1712_v25, %v665_v44  ;;  %v685_v32 = vadd.f32 %v1710_v53, %v684_v21  ;;  %v1714_v37 = vpop.eup %1713  ;;  %vm702_vm2 = vweird.f32 %v1712_v25  ;;  %v2575_v44 = vld [vmem:[#allocation5 + $0x188] sm:$0xff] }
 0x299   :  { %v674_v36 = vsel %vm673_vm14, %v1708_v59, %v670_v26  ;;  %vm703_vm4 = vmor %vm701_vm3, %vm702_vm2  ;;  %v2578_v59 = vld [vmem:[#allocation5 + $0x190] sm:$0xff]  ;;  %v2615_v21 = vld [vmem:[#allocation5 + $0x108] sm:$0xff] }
 0x29a   :  { %v698_v39 = vsub.f32 1.0, %v697_v30  ;;  %v679_v1 = vsel %vm676_vm0, %v678_v31, %v674_v36  ;;  %v689_v4 = vsel %vm688_vm15, %v1710_v53, %v685_v32  ;;  %v2585_v53 = vld [vmem:[#allocation5 + $0x168] sm:$0xff]  ;;  %v2624_v26 = vld [vmem:[#allocation5 + $0xe0] sm:$0xff]  ;;  %v2630_v31 = vld [vmem:[#allocation5 + $0xf0] sm:$0xff] }
 0x29b   :  { %v694_v5 = vsel %vm691_vm1, %v693_v34, %v689_v4  ;;  %v716_v7 = vmul.f32 %v1714_v37, %v679_v1  ;;  %v2627_v30 = vld [vmem:[#allocation5 + $0xe8] sm:$0xff]  ;;  %v2633_v32 = vld [vmem:[#allocation5 + $0xf8] sm:$0xff]  ;;  %v2642_v36 = vld [vmem:[#allocation5 + $0xd0] sm:$0xff] }
 0x29c   :  { %v715_v8 = vmul.f32 %v713_v33, %v694_v5  ;;  %v699_v23 = vmul.f32 %v1712_v25, %v698_v39  ;;  %v2636_v33 = vld [vmem:[#allocation5 + $0xc0] sm:$0xff]  ;;  %v2639_v34 = vld [vmem:[#allocation5 + $0xc8] sm:$0xff]  ;;  %3116 = vst [vmem:[#allocation13_spill] sm:$0xff] %v2642_v36  ;;  %v2645_v37 = vld [vmem:[#allocation5 + $0xd8] sm:$0xff] }
 0x29d   :  { %3114 = vst [vmem:[#allocation12_spill] sm:$0xff] %v2636_v33  ;;  %v2648_v39 = vld [vmem:[#allocation5 + $0xa0] sm:$0xff]  ;;  %v2651_v1 = vld [vmem:[#allocation5 + $0xa8] sm:$0xff]  ;;  %v2654_v4 = vld [vmem:[#allocation5 + $0xb0] sm:$0xff] }
 0x29e   :  { %v2547_v28 = vadd.f32 %v716_v7, %v715_v8  ;;  %v700_v3 = vadd.f32 %v1712_v25, %v699_v23  ;;  %3115 = vst [vmem:[#allocation15_spill] sm:$0xff] %v2639_v34  ;;  %v2657_v5 = vld [vmem:[#allocation5 + $0xb8] sm:$0xff]  ;;  %v2660_v7 = vld [vmem:[#allocation5 + $0x80] sm:$0xff]  ;;  %v2663_v8 = vld [vmem:[#allocation5 + $0x88] sm:$0xff] }
 0x29f   :  { %3117 = vst [vmem:[#allocation32_spill] sm:$0xff] %v2645_v37  ;;  %v2666_v23 = vld [vmem:[#allocation5 + $0x90] sm:$0xff] }
 0x2a0   :  { %1715 = vtanh.f32 %v2547_v28  ;;  %v704_v9 = vsel %vm703_vm4, %v1712_v25, %v700_v3  ;;  %v2621_v25 = vld [vmem:[#allocation5 + $0x118] sm:$0xff]  ;;  %3118 = vst [vmem:[#allocation17_spill] sm:$0xff] %v2648_v39  ;;  %vm1549_vm4 = vcmask 1042432  }
 0x2a1   :  { %v709_v13 = vsel %vm706_vm6, %v708_v10, %v704_v9  ;;  %3119 = vst [vmem:[#allocation18_spill] sm:$0xff] %v2651_v1  ;;  %v2669_v3 = vld [vmem:[#allocation5 + $0x98] sm:$0xff]  ;;  %v2678_v9 = vld [vmem:[#allocation5 + $0x70] sm:$0xff] }
 0x2a2   :  { %3120 = vst [vmem:[#allocation14_spill] sm:$0xff] %v2654_v4  ;;  %v2681_v10 = vld [vmem:[#allocation5 + $0x78] sm:$0xff] }
 0x2a3   :  { %3121 = vst [vmem:[#allocation33_spill] sm:$0xff] %v2657_v5 }
 0x2a4   :  { %3122 = vst [vmem:[#allocation21_spill] sm:$0xff] %v2660_v7 }
 0x2a5   :  { %3123 = vst [vmem:[#allocation22_spill] sm:$0xff] %v2663_v8 }
 0x2a6   :  { %v1716_v11 = vpop.eup %1715  ;;  %3124 = vst [vmem:[#allocation16_spill] sm:$0xff] %v2666_v23 }
 0x2a7   :  { %v719_v14 = vmul.f32 %v1716_v11, %v709_v13  ;;  %3125 = vst [vmem:[#allocation34_spill] sm:$0xff] %v2669_v3  ;;  %v2684_v11 = vld [vmem:[#allocation5 + $0x40] sm:$0xff]  ;;  %v2687_v13 = vld [vmem:[#allocation5 + $0x48] sm:$0xff] }
 0x2a8   :  { %3128 = vst [vmem:[#allocation19_spill] sm:$0xff] %v2678_v9 }
 0x2a9   :  { %v721_v20 = vrot.slane %v719_v14, 2  ;;  %v2552_v52 = vsel %vm1547_vm7, %v1546_v17, %v719_v14  ;;  %3129 = vst [vmem:[#allocation35_spill] sm:$0xff] %v2681_v10  ;;  %v2690_v14 = vld [vmem:[#allocation5 + $0x50] sm:$0xff]  ;;  %v2696_v17 = vld [vmem:[#allocation5 + $0x20] sm:$0xff] }
 0x2aa   :  { %3130 = vst [vmem:[#allocation26_spill] sm:$0xff] %v2684_v11 }
 0x2ab   :  { %739 = vmatmul.f32.vlgmr.msrb.gmra.mxu0 %v721_v20  ;;  %759 = vmatmul.f32.vlgmr.msrb.gmra.mxu1 %v721_v20  ;;  %3131 = vst [vmem:[#allocation27_spill] sm:$0xff] %v2687_v13 }
 0x2ac   :  { %779 = vmatmul.f32.vlgmr.msra.gmra.mxu2 %v721_v20  ;;  %811 = vmatmul.f32.vlgmr.msra.gmra.mxu3 %v721_v20  ;;  %3132 = vst [vmem:[#allocation20_spill] sm:$0xff] %v2690_v14  ;;  %v2699_v20 = vld [vmem:[#allocation5 + $0x28] sm:$0xff] }
 0x2ad   :  { %1053 = vmatpush.msrb.mxu0 %v2452_v35  ;;  %1073 = vmatpush.msrb.mxu1 %v2555_v55  ;;  %3134 = vst [vmem:[#allocation28_spill] sm:$0xff] %v2696_v17 }
 0x2ae   :  { %1093 = vmatpush.msra.mxu2 %v2456_v45  ;;  %1125 = vmatpush.msra.mxu3 %v2459_v24  ;;  %3135 = vst [vmem:[#allocation29_spill] sm:$0xff] %v2699_v20 }
 0x2af   :  { %1054 = vmatpush.msrb.mxu0 %v2462_v60  ;;  %1074 = vmatpush.msrb.mxu1 %v2561_v38 }
 0x2b0   :  { %1094 = vmatpush.msra.mxu2 %v2466_v49  ;;  %1126 = vmatpush.msra.mxu3 %v2469_v58 }
 0x2b1   :  { %1055 = vmatpush.msrb.mxu0 %v2472_v62  ;;  %1075 = vmatpush.msrb.mxu1 %v2567_v50 }
 0x2b2   :  { %1095 = vmatpush.msra.mxu2 %v2476_v63  ;;  %1127 = vmatpush.msra.mxu3 %v2571_v42 }
 0x2b3   :  { %1056 = vmatpush.msrb.mxu0 %v2480_v0  ;;  %1076 = vmatpush.msrb.mxu1 %v2575_v44 }
 0x2b4   :  { %1096 = vmatpush.msra.mxu2 %v2578_v59  ;;  %1128 = vmatpush.msra.mxu3 %v2581_v61 }
 0x2b5   :  { %1057 = vmatpush.msrb.mxu0 %v2486_v29  ;;  %1077 = vmatpush.msrb.mxu1 %v2585_v53 }
 0x2b6   :  { %1097 = vmatpush.msra.mxu2 %v2588_v51  ;;  %1129 = vmatpush.msra.mxu3 %v2591_v46 }
 0x2b7   :  { %1058 = vmatpush.msrb.mxu0 %v2492_v16  ;;  %1078 = vmatpush.msrb.mxu1 %v2595_v54 }
 0x2b8   :  { %1098 = vmatpush.msra.mxu2 %v2598_v40  ;;  %1130 = vmatpush.msra.mxu3 %v2601_v56 }
 0x2b9   :  { %1059 = vmatpush.msrb.mxu0 %v2498_v18  ;;  %1079 = vmatpush.msrb.mxu1 %v2605_v43 }
 0x2ba   :  { %1099 = vmatpush.msra.mxu2 %v2608_v41  ;;  %1131 = vmatpush.msra.mxu3 %v2611_v48 }
 0x2bb   :  { %1060 = vmatpush.msrb.mxu0 %v2504_v19  ;;  %1080 = vmatpush.msrb.mxu1 %v2615_v21 }
 0x2bc   :  { %1100 = vmatpush.msra.mxu2 %v2618_v22  ;;  %1132 = vmatpush.msra.mxu3 %v2621_v25 }
 0x2bd   :  { %1061 = vmatpush.msrb.mxu0 %v2624_v26  ;;  %1081 = vmatpush.msrb.mxu1 %v2627_v30 }
 0x2be   :  { %1101 = vmatpush.msra.mxu2 %v2630_v31  ;;  %1133 = vmatpush.msra.mxu3 %v2633_v32 }
 0x2bf   :  { %1062 = vmatpush.msrb.mxu0 %v2636_v33  ;;  %1082 = vmatpush.msrb.mxu1 %v2639_v34 }
 0x2c0   :  { %1102 = vmatpush.msra.mxu2 %v2642_v36  ;;  %1134 = vmatpush.msra.mxu3 %v2645_v37 }
 0x2c1   :  { %1063 = vmatpush.msrb.mxu0 %v2648_v39  ;;  %1083 = vmatpush.msrb.mxu1 %v2651_v1 }
 0x2c2   :  { %1103 = vmatpush.msra.mxu2 %v2654_v4  ;;  %1135 = vmatpush.msra.mxu3 %v2657_v5 }
 0x2c3   :  { %1064 = vmatpush.msrb.mxu0 %v2660_v7  ;;  %1084 = vmatpush.msrb.mxu1 %v2663_v8 }
 0x2c4   :  { %1104 = vmatpush.msra.mxu2 %v2666_v23  ;;  %1136 = vmatpush.msra.mxu3 %v2669_v3 }
 0x2c5   :  { %1065 = vmatpush.msrb.mxu0 %v2672_v47  ;;  %1085 = vmatpush.msrb.mxu1 %v2675_v6 }
 0x2c6   :  { %1105 = vmatpush.msra.mxu2 %v2678_v9  ;;  %1137 = vmatpush.msra.mxu3 %v2681_v10 }
 0x2c7   :  { %1066 = vmatpush.msrb.mxu0 %v2684_v11  ;;  %1086 = vmatpush.msrb.mxu1 %v2687_v13  ;;  %v2702_v11 = vld [vmem:[#allocation5 + $0x30] sm:$0xff]  ;;  %v2705_v13 = vld [vmem:[#allocation5 + $0x38] sm:$0xff] }
 0x2c8   :  { %1106 = vmatpush.msra.mxu2 %v2690_v14  ;;  %1138 = vmatpush.msra.mxu3 %v2693_v15  ;;  %3136 = vst [vmem:[#allocation23_spill] sm:$0xff] %v2702_v11  ;;  %v2708_v14 = vld [vmem:[#allocation5] sm:$0xff]  ;;  %v2711_v15 = vld [vmem:[#allocation5 + $0x8] sm:$0xff] }
 0x2c9   :  { %1067 = vmatpush.msrb.mxu0 %v2696_v17  ;;  %1087 = vmatpush.msrb.mxu1 %v2699_v20  ;;  %3137 = vst [vmem:[#allocation37_spill] sm:$0xff] %v2705_v13  ;;  %v2714_v17 = vld [vmem:[#allocation5 + $0x10] sm:$0xff]  ;;  %v2717_v20 = vld [vmem:[#allocation5 + $0x18] sm:$0xff] }
 0x2ca   :  { %1107 = vmatpush.msra.mxu2 %v2702_v11  ;;  %1139 = vmatpush.msra.mxu3 %v2705_v13  ;;  %3138 = vst [vmem:[#allocation30_spill] sm:$0xff] %v2708_v14 }
 0x2cb   :  { %1068 = vmatpush.msrb.mxu0 %v2708_v14  ;;  %3139 = vst [vmem:[#allocation31_spill] sm:$0xff] %v2711_v15  ;;  %1088 = vmatpush.msrb.mxu1 %v2711_v15 }
 0x2cc   :  { %3140 = vst [vmem:[#allocation42_spill] sm:$0xff] %v2714_v17  ;;  %1108 = vmatpush.msra.mxu2 %v2714_v17  ;;  %1140 = vmatpush.msra.mxu3 %v2717_v20 }
 0x2cd   :  { %3141 = vst [vmem:[#allocation43_spill] sm:$0xff] %v2717_v20 }
 0x328   :  { %v740_v11 = vpop.f32.mrf.mxu0  ;;  %v760_v10 = vpop.f32.mrf.mxu1 }
 0x329   :  { %v786_v9 = vrot.slane %v740_v11, 5  ;;  %v787_v13 = vrot.slane %v760_v10, 5 }
 0x32b   :  { %v792_v6 = vadd.f32 %v786_v9, %v3109_v27  ;;  %v793_v14 = vadd.f32 %v787_v13, %v3110_v2 }
 0x32d   :  { %v1642_v47 = vmul.f32 -1.442695, %v792_v6  ;;  %v1643_v3 = vmul.f32 -1.442695, %v793_v14 }
 0x32f   :  { %1717 = vpow2.f32 %v1642_v47  ;;  %v780_v15 = vpop.f32.mrf.mxu2  ;;  %v812_v11 = vpop.f32.mrf.mxu3 }
 0x330   :  { %1719 = vpow2.f32 %v1643_v3  ;;  %v788_v23 = vrot.slane %v780_v15, 5  ;;  %v816_v9 = vrot.slane %v812_v11, 5 }
 0x332   :  { %v794_v17 = vadd.f32 %v788_v23, %v3111_v12  ;;  %v818_v47 = vadd.f32 %v816_v9, %v3112_v57 }
 0x334   :  { %v1644_v8 = vmul.f32 -1.442695, %v794_v17 }
 0x335   :  { %v1718_v7 = vpop.eup %1717 }
 0x336   :  { %v1720_v5 = vpop.eup %1719  ;;  %v828_v20 = vadd.f32 1.0, %v1718_v7  ;;  %1721 = vpow2.f32 %v1644_v8 }
 0x337   :  { %v829_v4 = vadd.f32 1.0, %v1720_v5 }
 0x338   :  { %1723 = vrcp.f32 %v828_v20  ;;  %v842_v12 = vand.u32 2147483648, %v828_v20  ;;  %v840_v5 = vand.u32 2147483647, %v828_v20  ;;  %vm836_vm10 = vweird.f32 %v828_v20 }
 0x339   :  { %1725 = vrcp.f32 %v829_v4  ;;  %v857_v7 = vand.u32 2147483648, %v829_v4  ;;  %v855_v11 = vand.u32 2147483647, %v829_v4  ;;  %vm851_vm11 = vweird.f32 %v829_v4 }
 0x33a   :  { %v843_v57 = vor.u32 1.1754944e-38, %v842_v12  ;;  %vm841_vm14 = vcmp.eq.f32.partialorder %v840_v5, 8.507059e+37  ;;  %v3149_v5 = vld [vmem:[#allocation33_spill] sm:$0xff] }
 0x33b   :  { %vm856_vm15 = vcmp.eq.f32.partialorder %v855_v11, 8.507059e+37  ;;  %v3150_v11 = vld [vmem:[#allocation21_spill] sm:$0xff] }
 0x33c   :  { %v1722_v10 = vpop.eup %1721 }
 0x33d   :  { %v830_v13 = vadd.f32 1.0, %v1722_v10 }
 0x33e   :  { %v1724_v6 = vpop.eup %1723 }
 0x33f   :  { %v1726_v14 = vpop.eup %1725  ;;  %v832_v3 = vmul.f32 %v1724_v6, %v828_v20  ;;  %1727 = vrcp.f32 %v830_v13  ;;  %vm837_vm8 = vweird.f32 %v1724_v6  ;;  %vm866_vm1 = vweird.f32 %v830_v13 }
 0x340   :  { %v847_v15 = vmul.f32 %v1726_v14, %v829_v4  ;;  %1729 = vtanh.f32 %v818_v47  ;;  %vm852_vm9 = vweird.f32 %v1726_v14  ;;  %vm838_vm12 = vmor %vm836_vm10, %vm837_vm8  ;;  %v870_v12 = vand.u32 2147483647, %v830_v13 }
 0x341   :  { %v833_v23 = vsub.f32 1.0, %v832_v3  ;;  %v878_v3 = vrot.slane %v2547_v28, 7  ;;  %vm853_vm13 = vmor %vm851_vm11, %vm852_vm9 }
 0x342   :  { %v848_v17 = vsub.f32 1.0, %v847_v15  ;;  %v858_v15 = vor.u32 1.1754944e-38, %v857_v7  ;;  %vm871_vm3 = vcmp.eq.f32.partialorder %v870_v12, 8.507059e+37  ;;  %v3148_v7 = vld [vmem:[#allocation14_spill] sm:$0xff]  ;;  %v3161_v12 = vld [vmem:[#allocation36_spill] sm:$0xff] }
 0x343   :  { %v834_v8 = vmul.f32 %v1724_v6, %v833_v23 }
 0x344   :  { %v849_v2 = vmul.f32 %v1726_v14, %v848_v17 }
 0x345   :  { %v1728_v27 = vpop.eup %1727  ;;  %v835_v10 = vadd.f32 %v1724_v6, %v834_v8 }
 0x346   :  { %v862_v9 = vmul.f32 %v1728_v27, %v830_v13  ;;  %v850_v1 = vadd.f32 %v1726_v14, %v849_v2  ;;  %v1730_v23 = vpop.eup %1729  ;;  %vm867_vm0 = vweird.f32 %v1728_v27  ;;  %v872_v2 = vand.u32 2147483648, %v830_v13  ;;  %v3147_v13 = vld [vmem:[#allocation18_spill] sm:$0xff] }
 0x347   :  { %v839_v47 = vsel %vm838_vm12, %v1724_v6, %v835_v10  ;;  %vm868_vm2 = vmor %vm866_vm1, %vm867_vm0  ;;  %v3151_v10 = vld [vmem:[#allocation22_spill] sm:$0xff]  ;;  %vm1551_vm1 = vcmask 1043456  }
 0x348   :  { %v863_v39 = vsub.f32 1.0, %v862_v9  ;;  %v844_v37 = vsel %vm841_vm14, %v843_v57, %v839_v47  ;;  %v854_v17 = vsel %vm853_vm13, %v1726_v14, %v850_v1  ;;  %v873_v6 = vor.u32 1.1754944e-38, %v872_v2  ;;  %v3152_v9 = vld [vmem:[#allocation16_spill] sm:$0xff]  ;;  %v3155_v47 = vld [vmem:[#allocation25_spill] sm:$0xff] }
 0x349   :  { %v859_v36 = vsel %vm856_vm15, %v858_v15, %v854_v17  ;;  %v881_v34 = vmul.f32 %v1730_v23, %v844_v37  ;;  %v3154_v15 = vld [vmem:[#allocation24_spill] sm:$0xff]  ;;  %v3156_v23 = vld [vmem:[#allocation19_spill] sm:$0xff] }
 0x34a   :  { %v880_v8 = vmul.f32 %v878_v3, %v859_v36  ;;  %v864_v20 = vmul.f32 %v1728_v27, %v863_v39  ;;  %v3146_v39 = vld [vmem:[#allocation17_spill] sm:$0xff]  ;;  %v3153_v3 = vld [vmem:[#allocation34_spill] sm:$0xff]  ;;  %v3157_v17 = vld [vmem:[#allocation35_spill] sm:$0xff] }
 0x34b   :  { %v3160_v2 = vld [vmem:[#allocation20_spill] sm:$0xff] }
 0x34c   :  { %v2725_v4 = vadd.f32 %v881_v34, %v880_v8  ;;  %v865_v33 = vadd.f32 %v1728_v27, %v864_v20  ;;  %v3145_v34 = vld [vmem:[#allocation32_spill] sm:$0xff]  ;;  %v3158_v8 = vld [vmem:[#allocation26_spill] sm:$0xff]  ;;  %v3159_v20 = vld [vmem:[#allocation27_spill] sm:$0xff] }
 0x34e   :  { %1731 = vtanh.f32 %v2725_v4  ;;  %v869_v28 = vsel %vm868_vm2, %v1728_v27, %v865_v33  ;;  %v3142_v27 = vld [vmem:[#allocation12_spill] sm:$0xff]  ;;  %v3144_v33 = vld [vmem:[#allocation13_spill] sm:$0xff] }
 0x34f   :  { %v874_v1 = vsel %vm871_vm3, %v873_v6, %v869_v28  ;;  %v3162_v28 = vld [vmem:[#allocation28_spill] sm:$0xff]  ;;  %v3163_v6 = vld [vmem:[#allocation29_spill] sm:$0xff] }
 0x354   :  { %v1732_v57 = vpop.eup %1731 }
 0x355   :  { %v884_v14 = vmul.f32 %v1732_v57, %v874_v1  ;;  %v3164_v57 = vld [vmem:[#allocation23_spill] sm:$0xff]  ;;  %v3165_v1 = vld [vmem:[#allocation37_spill] sm:$0xff] }
 0x357   :  { %v886_v37 = vrot.slane %v884_v14, 3  ;;  %v2729_v36 = vsel %vm1549_vm4, %v2552_v52, %v884_v14  ;;  %v3143_v52 = vld [vmem:[#allocation15_spill] sm:$0xff]  ;;  %v3166_v14 = vld [vmem:[#allocation30_spill] sm:$0xff] }
 0x359   :  { %904 = vmatmul.f32.vlgmr.msra.gmra.mxu0 %v886_v37  ;;  %924 = vmatmul.f32.vlgmr.msra.gmra.mxu1 %v886_v37 }
 0x35a   :  { %944 = vmatmul.f32.vlgmr.msrb.gmra.mxu2 %v886_v37  ;;  %976 = vmatmul.f32.vlgmr.msrb.gmra.mxu3 %v886_v37  ;;  %v3167_v37 = vld [vmem:[#allocation31_spill] sm:$0xff] }
 0x35b   :  { %1218 = vmatpush.msra.mxu0 %v2452_v35  ;;  %1238 = vmatpush.msra.mxu1 %v2555_v55 }
 0x35c   :  { %1258 = vmatpush.msrb.mxu2 %v2456_v45  ;;  %1290 = vmatpush.msrb.mxu3 %v2459_v24 }
 0x35d   :  { %1219 = vmatpush.msra.mxu0 %v2462_v60  ;;  %1239 = vmatpush.msra.mxu1 %v2561_v38 }
 0x35e   :  { %1259 = vmatpush.msrb.mxu2 %v2466_v49  ;;  %1291 = vmatpush.msrb.mxu3 %v2469_v58 }
 0x35f   :  { %1220 = vmatpush.msra.mxu0 %v2472_v62  ;;  %1240 = vmatpush.msra.mxu1 %v2567_v50 }
 0x360   :  { %1260 = vmatpush.msrb.mxu2 %v2476_v63  ;;  %1292 = vmatpush.msrb.mxu3 %v2571_v42 }
 0x361   :  { %1221 = vmatpush.msra.mxu0 %v2480_v0  ;;  %1241 = vmatpush.msra.mxu1 %v2575_v44 }
 0x362   :  { %1261 = vmatpush.msrb.mxu2 %v2578_v59  ;;  %1293 = vmatpush.msrb.mxu3 %v2581_v61 }
 0x363   :  { %1222 = vmatpush.msra.mxu0 %v2486_v29  ;;  %1242 = vmatpush.msra.mxu1 %v2585_v53 }
 0x364   :  { %1262 = vmatpush.msrb.mxu2 %v2588_v51  ;;  %1294 = vmatpush.msrb.mxu3 %v2591_v46 }
 0x365   :  { %1223 = vmatpush.msra.mxu0 %v2492_v16  ;;  %1243 = vmatpush.msra.mxu1 %v2595_v54 }
 0x366   :  { %1263 = vmatpush.msrb.mxu2 %v2598_v40  ;;  %1295 = vmatpush.msrb.mxu3 %v2601_v56 }
 0x367   :  { %1224 = vmatpush.msra.mxu0 %v2498_v18  ;;  %1244 = vmatpush.msra.mxu1 %v2605_v43 }
 0x368   :  { %1264 = vmatpush.msrb.mxu2 %v2608_v41  ;;  %1296 = vmatpush.msrb.mxu3 %v2611_v48 }
 0x369   :  { %1225 = vmatpush.msra.mxu0 %v2504_v19  ;;  %1245 = vmatpush.msra.mxu1 %v2615_v21 }
 0x36a   :  { %1265 = vmatpush.msrb.mxu2 %v2618_v22  ;;  %1297 = vmatpush.msrb.mxu3 %v2621_v25 }
 0x36b   :  { %1226 = vmatpush.msra.mxu0 %v2624_v26  ;;  %1246 = vmatpush.msra.mxu1 %v2627_v30 }
 0x36c   :  { %1266 = vmatpush.msrb.mxu2 %v2630_v31  ;;  %1298 = vmatpush.msrb.mxu3 %v2633_v32 }
 0x36d   :  { %1227 = vmatpush.msra.mxu0 %v3142_v27  ;;  %1247 = vmatpush.msra.mxu1 %v3143_v52 }
 0x36e   :  { %1267 = vmatpush.msrb.mxu2 %v3144_v33  ;;  %1299 = vmatpush.msrb.mxu3 %v3145_v34 }
 0x36f   :  { %1228 = vmatpush.msra.mxu0 %v3146_v39  ;;  %1248 = vmatpush.msra.mxu1 %v3147_v13 }
 0x370   :  { %1268 = vmatpush.msrb.mxu2 %v3148_v7  ;;  %1300 = vmatpush.msrb.mxu3 %v3149_v5 }
 0x371   :  { %1229 = vmatpush.msra.mxu0 %v3150_v11  ;;  %1249 = vmatpush.msra.mxu1 %v3151_v10 }
 0x372   :  { %1269 = vmatpush.msrb.mxu2 %v3152_v9  ;;  %1301 = vmatpush.msrb.mxu3 %v3153_v3  ;;  %v3172_v9 = vld [vmem:[#allocation39_spill] sm:$0xff] }
 0x373   :  { %1230 = vmatpush.msra.mxu0 %v3154_v15  ;;  %1250 = vmatpush.msra.mxu1 %v3155_v47  ;;  %v3170_v47 = vld [vmem:[#allocation38_spill] sm:$0xff]  ;;  %v3171_v15 = vld [vmem:[#allocation40_spill] sm:$0xff] }
 0x374   :  { %1270 = vmatpush.msrb.mxu2 %v3156_v23  ;;  %1302 = vmatpush.msrb.mxu3 %v3157_v17  ;;  %v3168_v17 = vld [vmem:[#allocation42_spill] sm:$0xff] }
 0x375   :  { %1231 = vmatpush.msra.mxu0 %v3158_v8  ;;  %1251 = vmatpush.msra.mxu1 %v3159_v20  ;;  %v3169_v8 = vld [vmem:[#allocation43_spill] sm:$0xff] }
 0x376   :  { %1271 = vmatpush.msrb.mxu2 %v3160_v2  ;;  %1303 = vmatpush.msrb.mxu3 %v3161_v12 }
 0x377   :  { %1232 = vmatpush.msra.mxu0 %v3162_v28  ;;  %1252 = vmatpush.msra.mxu1 %v3163_v6 }
 0x378   :  { %1272 = vmatpush.msrb.mxu2 %v3164_v57  ;;  %1304 = vmatpush.msrb.mxu3 %v3165_v1 }
 0x379   :  { %1233 = vmatpush.msra.mxu0 %v3166_v14  ;;  %1253 = vmatpush.msra.mxu1 %v3167_v37 }
 0x37a   :  { %1273 = vmatpush.msrb.mxu2 %v3168_v17  ;;  %1305 = vmatpush.msrb.mxu3 %v3169_v8 }
 0x3d6   :  { %v905_v20 = vpop.f32.mrf.mxu0  ;;  %v925_v2 = vpop.f32.mrf.mxu1 }
 0x3d7   :  { %v951_v23 = vrot.slane %v905_v20, 4  ;;  %v952_v12 = vrot.slane %v925_v2, 4 }
 0x3d9   :  { %v957_v28 = vadd.f32 %v951_v23, %v3170_v47  ;;  %v958_v6 = vadd.f32 %v952_v12, %v3171_v15 }
 0x3db   :  { %v1645_v3 = vmul.f32 -1.442695, %v957_v28  ;;  %v1646_v57 = vmul.f32 -1.442695, %v958_v6  ;;  %v3173_v6 = vld [vmem:[#allocation41_spill] sm:$0xff] }
 0x3dd   :  { %1733 = vpow2.f32 %v1645_v3  ;;  %v945_v1 = vpop.f32.mrf.mxu2  ;;  %v977_v20 = vpop.f32.mrf.mxu3 }
 0x3de   :  { %1735 = vpow2.f32 %v1646_v57  ;;  %v953_v14 = vrot.slane %v945_v1, 4  ;;  %v981_v23 = vrot.slane %v977_v20, 4 }
 0x3e0   :  { %v959_v37 = vadd.f32 %v953_v14, %v3172_v9  ;;  %v983_v3 = vadd.f32 %v981_v23, %v3173_v6 }
 0x3e2   :  { %v1647_v10 = vmul.f32 -1.442695, %v959_v37 }
 0x3e3   :  { %v1734_v17 = vpop.eup %1733 }
 0x3e4   :  { %v1736_v11 = vpop.eup %1735  ;;  %v993_v8 = vadd.f32 1.0, %v1734_v17  ;;  %1737 = vpow2.f32 %v1647_v10 }
 0x3e5   :  { %v994_v5 = vadd.f32 1.0, %v1736_v11 }
 0x3e6   :  { %1739 = vrcp.f32 %v993_v8  ;;  %v1007_v9 = vand.u32 2147483648, %v993_v8  ;;  %v1005_v11 = vand.u32 2147483647, %v993_v8  ;;  %vm1001_vm7 = vweird.f32 %v993_v8 }
 0x3e7   :  { %1741 = vrcp.f32 %v994_v5  ;;  %v1022_v17 = vand.u32 2147483648, %v994_v5  ;;  %v1020_v20 = vand.u32 2147483647, %v994_v5  ;;  %vm1016_vm8 = vweird.f32 %v994_v5 }
 0x3e8   :  { %v1008_v6 = vor.u32 1.1754944e-38, %v1007_v9  ;;  %vm1006_vm11 = vcmp.eq.f32.partialorder %v1005_v11, 8.507059e+37 }
 0x3e9   :  { %vm1021_vm12 = vcmp.eq.f32.partialorder %v1020_v20, 8.507059e+37 }
 0x3ea   :  { %v1738_v2 = vpop.eup %1737 }
 0x3eb   :  { %v995_v12 = vadd.f32 1.0, %v1738_v2 }
 0x3ec   :  { %v1740_v28 = vpop.eup %1739 }
 0x3ed   :  { %v1742_v15 = vpop.eup %1741  ;;  %v997_v57 = vmul.f32 %v1740_v28, %v993_v8  ;;  %1743 = vrcp.f32 %v995_v12  ;;  %vm1002_vm5 = vweird.f32 %v1740_v28  ;;  %vm1031_vm14 = vweird.f32 %v995_v12 }
 0x3ee   :  { %v1012_v1 = vmul.f32 %v1742_v15, %v994_v5  ;;  %1745 = vtanh.f32 %v983_v3  ;;  %vm1017_vm6 = vweird.f32 %v1742_v15  ;;  %vm1003_vm9 = vmor %vm1001_vm7, %vm1002_vm5  ;;  %v1035_v9 = vand.u32 2147483647, %v995_v12 }
 0x3ef   :  { %v998_v14 = vsub.f32 1.0, %v997_v57  ;;  %v1043_v57 = vrot.slane %v2725_v4, 7  ;;  %vm1018_vm10 = vmor %vm1016_vm8, %vm1017_vm6  ;;  %v1037_v4 = vand.u32 2147483648, %v995_v12 }
 0x3f0   :  { %v1013_v37 = vsub.f32 1.0, %v1012_v1  ;;  %v1023_v1 = vor.u32 1.1754944e-38, %v1022_v17  ;;  %vm1036_vm0 = vcmp.eq.f32.partialorder %v1035_v9, 8.507059e+37 }
 0x3f1   :  { %v999_v10 = vmul.f32 %v1740_v28, %v998_v14 }
 0x3f2   :  { %v1014_v47 = vmul.f32 %v1742_v15, %v1013_v37 }
 0x3f3   :  { %v1744_v7 = vpop.eup %1743  ;;  %v1000_v2 = vadd.f32 %v1740_v28, %v999_v10 }
 0x3f4   :  { %v1027_v23 = vmul.f32 %v1744_v7, %v995_v12  ;;  %v1015_v13 = vadd.f32 %v1742_v15, %v1014_v47  ;;  %v1746_v14 = vpop.eup %1745  ;;  %vm1032_vm13 = vweird.f32 %v1744_v7 }
 0x3f5   :  { %v1004_v3 = vsel %vm1003_vm9, %v1740_v28, %v1000_v2  ;;  %vm1033_vm15 = vmor %vm1031_vm14, %vm1032_vm13  ;;  %v1038_v28 = vor.u32 1.1754944e-38, %v1037_v4  ;;  %vm1553_vm14 = vcmask 1044480  }
 0x3f6   :  { %v1028_v39 = vsub.f32 1.0, %v1027_v23  ;;  %v1009_v34 = vsel %vm1006_vm11, %v1008_v6, %v1004_v3  ;;  %v1019_v37 = vsel %vm1018_vm10, %v1742_v15, %v1015_v13 }
 0x3f7   :  { %v1024_v33 = vsel %vm1021_vm12, %v1023_v1, %v1019_v37  ;;  %v1046_v52 = vmul.f32 %v1746_v14, %v1009_v34 }
 0x3f8   :  { %v1045_v10 = vmul.f32 %v1043_v57, %v1024_v33  ;;  %v1029_v8 = vmul.f32 %v1744_v7, %v1028_v39 }
 0x3fa   :  { %v2800_v5 = vadd.f32 %v1046_v52, %v1045_v10  ;;  %v1030_v27 = vadd.f32 %v1744_v7, %v1029_v8  ;;  %v3205_v10 = vld [vmem:[#allocation41_spill] sm:$0xff] }
 0x3fc   :  { %1747 = vtanh.f32 %v2800_v5  ;;  %v1034_v47 = vsel %vm1033_vm15, %v1744_v7, %v1030_v27  ;;  %v3204_v7 = vld [vmem:[#allocation39_spill] sm:$0xff] }
 0x3fd   :  { %v1039_v13 = vsel %vm1036_vm0, %v1038_v28, %v1034_v47 }
 0x402   :  { %v1748_v6 = vpop.eup %1747 }
 0x403   :  { %v1049_v15 = vmul.f32 %v1748_v6, %v1039_v13 }
 0x405   :  { %v1051_v34 = vrot.slane %v1049_v15, 4  ;;  %v2804_v33 = vsel %vm1551_vm1, %v2729_v36, %v1049_v15 }
 0x407   :  { %1069 = vmatmul.f32.vlgmr.msrb.gmra.mxu0 %v1051_v34  ;;  %1089 = vmatmul.f32.vlgmr.msrb.gmra.mxu1 %v1051_v34 }
 0x408   :  { %1109 = vmatmul.f32.vlgmr.msra.gmra.mxu2 %v1051_v34  ;;  %1141 = vmatmul.f32.vlgmr.msra.gmra.mxu3 %v1051_v34 }
 0x409   :  { %1383 = vmatpush.msrb.mxu0 %v2452_v35  ;;  %1403 = vmatpush.msrb.mxu1 %v2555_v55  ;;  %v3174_v35 = vld [vmem:[#allocation12_spill] sm:$0xff]  ;;  %v3187_v55 = vld [vmem:[#allocation25_spill] sm:$0xff] }
 0x40a   :  { %1423 = vmatpush.msra.mxu2 %v2456_v45  ;;  %1455 = vmatpush.msra.mxu3 %v2459_v24  ;;  %v3175_v45 = vld [vmem:[#allocation15_spill] sm:$0xff]  ;;  %v3176_v24 = vld [vmem:[#allocation13_spill] sm:$0xff] }
 0x40b   :  { %1384 = vmatpush.msrb.mxu0 %v2462_v60  ;;  %1404 = vmatpush.msrb.mxu1 %v2561_v38  ;;  %v3177_v60 = vld [vmem:[#allocation32_spill] sm:$0xff]  ;;  %v3188_v38 = vld [vmem:[#allocation19_spill] sm:$0xff] }
 0x40c   :  { %1424 = vmatpush.msra.mxu2 %v2466_v49  ;;  %1456 = vmatpush.msra.mxu3 %v2469_v58  ;;  %v3178_v49 = vld [vmem:[#allocation17_spill] sm:$0xff]  ;;  %v3179_v58 = vld [vmem:[#allocation18_spill] sm:$0xff] }
 0x40d   :  { %1385 = vmatpush.msrb.mxu0 %v2472_v62  ;;  %1405 = vmatpush.msrb.mxu1 %v2567_v50  ;;  %v3180_v62 = vld [vmem:[#allocation14_spill] sm:$0xff]  ;;  %v3189_v50 = vld [vmem:[#allocation35_spill] sm:$0xff] }
 0x40e   :  { %1425 = vmatpush.msra.mxu2 %v2476_v63  ;;  %1457 = vmatpush.msra.mxu3 %v2571_v42  ;;  %v3181_v63 = vld [vmem:[#allocation33_spill] sm:$0xff]  ;;  %v3190_v42 = vld [vmem:[#allocation26_spill] sm:$0xff] }
 0x40f   :  { %1386 = vmatpush.msrb.mxu0 %v2480_v0  ;;  %1406 = vmatpush.msrb.mxu1 %v2575_v44  ;;  %v3182_v0 = vld [vmem:[#allocation21_spill] sm:$0xff]  ;;  %v3191_v44 = vld [vmem:[#allocation27_spill] sm:$0xff] }
 0x410   :  { %1426 = vmatpush.msra.mxu2 %v2578_v59  ;;  %1458 = vmatpush.msra.mxu3 %v2581_v61  ;;  %v3192_v59 = vld [vmem:[#allocation20_spill] sm:$0xff] }
 0x411   :  { %1387 = vmatpush.msrb.mxu0 %v2486_v29  ;;  %1407 = vmatpush.msrb.mxu1 %v2585_v53  ;;  %v3183_v29 = vld [vmem:[#allocation22_spill] sm:$0xff]  ;;  %v3193_v61 = vld [vmem:[#allocation36_spill] sm:$0xff] }
 0x412   :  { %1427 = vmatpush.msra.mxu2 %v2588_v51  ;;  %1459 = vmatpush.msra.mxu3 %v2591_v46  ;;  %v3194_v53 = vld [vmem:[#allocation28_spill] sm:$0xff]  ;;  %v3195_v51 = vld [vmem:[#allocation29_spill] sm:$0xff]  ;;  %v3196_v46 = vld [vmem:[#allocation23_spill] sm:$0xff] }
 0x413   :  { %1388 = vmatpush.msrb.mxu0 %v2492_v16  ;;  %1408 = vmatpush.msrb.mxu1 %v2595_v54  ;;  %v3184_v16 = vld [vmem:[#allocation16_spill] sm:$0xff]  ;;  %v3197_v54 = vld [vmem:[#allocation37_spill] sm:$0xff] }
 0x414   :  { %1428 = vmatpush.msra.mxu2 %v2598_v40  ;;  %1460 = vmatpush.msra.mxu3 %v2601_v56  ;;  %v3198_v40 = vld [vmem:[#allocation30_spill] sm:$0xff]  ;;  %v3199_v56 = vld [vmem:[#allocation31_spill] sm:$0xff] }
 0x415   :  { %1389 = vmatpush.msrb.mxu0 %v2498_v18  ;;  %1409 = vmatpush.msrb.mxu1 %v2605_v43  ;;  %v3185_v18 = vld [vmem:[#allocation34_spill] sm:$0xff] }
 0x416   :  { %1429 = vmatpush.msra.mxu2 %v2608_v41  ;;  %1461 = vmatpush.msra.mxu3 %v2611_v48  ;;  %v3200_v43 = vld [vmem:[#allocation42_spill] sm:$0xff]  ;;  %v3201_v41 = vld [vmem:[#allocation43_spill] sm:$0xff] }
 0x417   :  { %1390 = vmatpush.msrb.mxu0 %v2504_v19  ;;  %1410 = vmatpush.msrb.mxu1 %v2615_v21  ;;  %v3186_v19 = vld [vmem:[#allocation24_spill] sm:$0xff] }
 0x418   :  { %1430 = vmatpush.msra.mxu2 %v2618_v22  ;;  %1462 = vmatpush.msra.mxu3 %v2621_v25 }
 0x419   :  { %1391 = vmatpush.msrb.mxu0 %v2624_v26  ;;  %1411 = vmatpush.msrb.mxu1 %v2627_v30  ;;  %v3202_v26 = vld [vmem:[#allocation38_spill] sm:$0xff] }
 0x41a   :  { %1431 = vmatpush.msra.mxu2 %v2630_v31  ;;  %1463 = vmatpush.msra.mxu3 %v2633_v32  ;;  %v3203_v31 = vld [vmem:[#allocation40_spill] sm:$0xff] }
 0x41b   :  { %1392 = vmatpush.msrb.mxu0 %v3174_v35  ;;  %1412 = vmatpush.msrb.mxu1 %v3175_v45 }
 0x41c   :  { %1432 = vmatpush.msra.mxu2 %v3176_v24  ;;  %1464 = vmatpush.msra.mxu3 %v3177_v60 }
 0x41d   :  { %1393 = vmatpush.msrb.mxu0 %v3178_v49  ;;  %1413 = vmatpush.msrb.mxu1 %v3179_v58 }
 0x41e   :  { %1433 = vmatpush.msra.mxu2 %v3180_v62  ;;  %1465 = vmatpush.msra.mxu3 %v3181_v63 }
 0x41f   :  { %1394 = vmatpush.msrb.mxu0 %v3182_v0  ;;  %1414 = vmatpush.msrb.mxu1 %v3183_v29  ;;  %v1208_v0 = vrot.slane %v2800_v5, 7 }
 0x420   :  { %1434 = vmatpush.msra.mxu2 %v3184_v16  ;;  %1466 = vmatpush.msra.mxu3 %v3185_v18 }
 0x421   :  { %1395 = vmatpush.msrb.mxu0 %v3186_v19  ;;  %1415 = vmatpush.msrb.mxu1 %v3187_v55 }
 0x422   :  { %1435 = vmatpush.msra.mxu2 %v3188_v38  ;;  %1467 = vmatpush.msra.mxu3 %v3189_v50 }
 0x423   :  { %1396 = vmatpush.msrb.mxu0 %v3190_v42  ;;  %1416 = vmatpush.msrb.mxu1 %v3191_v44 }
 0x424   :  { %1436 = vmatpush.msra.mxu2 %v3192_v59  ;;  %1468 = vmatpush.msra.mxu3 %v3193_v61 }
 0x425   :  { %1397 = vmatpush.msrb.mxu0 %v3194_v53  ;;  %1417 = vmatpush.msrb.mxu1 %v3195_v51 }
 0x426   :  { %1437 = vmatpush.msra.mxu2 %v3196_v46  ;;  %1469 = vmatpush.msra.mxu3 %v3197_v54 }
 0x427   :  { %1398 = vmatpush.msrb.mxu0 %v3198_v40  ;;  %1418 = vmatpush.msrb.mxu1 %v3199_v56 }
 0x428   :  { %1438 = vmatpush.msra.mxu2 %v3200_v43  ;;  %1470 = vmatpush.msra.mxu3 %v3201_v41 }
 0x484   :  { %v1070_v48 = vpop.f32.mrf.mxu0  ;;  %v1090_v21 = vpop.f32.mrf.mxu1 }
 0x485   :  { %v1116_v22 = vrot.slane %v1070_v48, 3  ;;  %v1117_v25 = vrot.slane %v1090_v21, 3 }
 0x487   :  { %v1122_v30 = vadd.f32 %v1116_v22, %v3202_v26  ;;  %v1123_v32 = vadd.f32 %v1117_v25, %v3203_v31 }
 0x489   :  { %v1648_v36 = vmul.f32 -1.442695, %v1122_v30  ;;  %v1649_v27 = vmul.f32 -1.442695, %v1123_v32 }
 0x48b   :  { %1749 = vpow2.f32 %v1648_v36  ;;  %v1110_v52 = vpop.f32.mrf.mxu2  ;;  %v1142_v57 = vpop.f32.mrf.mxu3 }
 0x48c   :  { %1751 = vpow2.f32 %v1649_v27  ;;  %v1118_v39 = vrot.slane %v1110_v52, 3  ;;  %v1146_v1 = vrot.slane %v1142_v57, 3 }
 0x48e   :  { %v1124_v12 = vadd.f32 %v1118_v39, %v3204_v7  ;;  %v1148_v8 = vadd.f32 %v1146_v1, %v3205_v10 }
 0x490   :  { %v1650_v17 = vmul.f32 -1.442695, %v1124_v12 }
 0x491   :  { %v1750_v11 = vpop.eup %1749 }
 0x492   :  { %v1752_v20 = vpop.eup %1751  ;;  %v1158_v2 = vadd.f32 1.0, %v1750_v11  ;;  %1753 = vpow2.f32 %v1650_v17 }
 0x493   :  { %v1159_v23 = vadd.f32 1.0, %v1752_v20 }
 0x494   :  { %1755 = vrcp.f32 %v1158_v2  ;;  %v1172_v13 = vand.u32 2147483648, %v1158_v2  ;;  %v1170_v35 = vand.u32 2147483647, %v1158_v2  ;;  %vm1166_vm4 = vweird.f32 %v1158_v2 }
 0x495   :  { %1757 = vrcp.f32 %v1159_v23  ;;  %v1187_v15 = vand.u32 2147483648, %v1159_v23  ;;  %v1185_v24 = vand.u32 2147483647, %v1159_v23  ;;  %vm1181_vm5 = vweird.f32 %v1159_v23 }
 0x496   :  { %v1173_v62 = vor.u32 1.1754944e-38, %v1172_v13  ;;  %vm1171_vm8 = vcmp.eq.f32.partialorder %v1170_v35, 8.507059e+37 }
 0x497   :  { %v1188_v29 = vor.u32 1.1754944e-38, %v1187_v15  ;;  %vm1186_vm9 = vcmp.eq.f32.partialorder %v1185_v24, 8.507059e+37 }
 0x498   :  { %v1754_v3 = vpop.eup %1753 }
 0x499   :  { %v1160_v14 = vadd.f32 1.0, %v1754_v3 }
 0x49a   :  { %v1756_v37 = vpop.eup %1755 }
 0x49b   :  { %v1758_v4 = vpop.eup %1757  ;;  %v1162_v9 = vmul.f32 %v1756_v37, %v1158_v2  ;;  %1759 = vrcp.f32 %v1160_v14  ;;  %vm1167_vm2 = vweird.f32 %v1756_v37  ;;  %v1202_v5 = vand.u32 2147483648, %v1160_v14 }
 0x49c   :  { %v1177_v47 = vmul.f32 %v1758_v4, %v1159_v23  ;;  %1761 = vtanh.f32 %v1148_v8  ;;  %vm1182_vm3 = vweird.f32 %v1758_v4  ;;  %vm1168_vm6 = vmor %vm1166_vm4, %vm1167_vm2  ;;  %vm1196_vm11 = vweird.f32 %v1160_v14 }
 0x49d   :  { %v1163_v28 = vsub.f32 1.0, %v1162_v9  ;;  %vm1183_vm7 = vmor %vm1181_vm5, %vm1182_vm3  ;;  %v1200_v51 = vand.u32 2147483647, %v1160_v14  ;;  %v1203_v54 = vor.u32 1.1754944e-38, %v1202_v5 }
 0x49e   :  { %v1178_v6 = vsub.f32 1.0, %v1177_v47 }
 0x49f   :  { %v1164_v34 = vmul.f32 %v1756_v37, %v1163_v28  ;;  %vm1201_vm13 = vcmp.eq.f32.partialorder %v1200_v51, 8.507059e+37 }
 0x4a0   :  { %v1179_v45 = vmul.f32 %v1758_v4, %v1178_v6 }
 0x4a1   :  { %v1760_v60 = vpop.eup %1759  ;;  %v1165_v49 = vadd.f32 %v1756_v37, %v1164_v34 }
 0x4a2   :  { %v1192_v58 = vmul.f32 %v1760_v60, %v1160_v14  ;;  %v1180_v63 = vadd.f32 %v1758_v4, %v1179_v45  ;;  %v1762_v18 = vpop.eup %1761  ;;  %vm1197_vm10 = vweird.f32 %v1760_v60 }
 0x4a3   :  { %v1169_v16 = vsel %vm1168_vm6, %v1756_v37, %v1165_v49  ;;  %vm1198_vm12 = vmor %vm1196_vm11, %vm1197_vm10  ;;  %vm1555_vm11 = vcmask 1045504  }
 0x4a4   :  { %v1193_v19 = vsub.f32 1.0, %v1192_v58  ;;  %v1174_v55 = vsel %vm1171_vm8, %v1173_v62, %v1169_v16  ;;  %v1184_v38 = vsel %vm1183_vm7, %v1758_v4, %v1180_v63 }
 0x4a5   :  { %v1189_v50 = vsel %vm1186_vm9, %v1188_v29, %v1184_v38  ;;  %v1211_v42 = vmul.f32 %v1762_v18, %v1174_v55 }
 0x4a6   :  { %v1210_v44 = vmul.f32 %v1208_v0, %v1189_v50  ;;  %v1194_v59 = vmul.f32 %v1760_v60, %v1193_v19 }
 0x4a8   :  { %v2875_v61 = vadd.f32 %v1211_v42, %v1210_v44  ;;  %v1195_v53 = vadd.f32 %v1760_v60, %v1194_v59 }
 0x4aa   :  { %1763 = vtanh.f32 %v2875_v61  ;;  %v1199_v46 = vsel %vm1198_vm12, %v1760_v60, %v1195_v53  ;;  %v1373_v0 = vrot.slane %v2875_v61, 7 }
 0x4ab   :  { %v1204_v56 = vsel %vm1201_vm13, %v1203_v54, %v1199_v46 }
 0x4b0   :  { %v1764_v40 = vpop.eup %1763 }
 0x4b1   :  { %v1214_v43 = vmul.f32 %v1764_v40, %v1204_v56 }
 0x4b3   :  { %v1216_v41 = vrot.slane %v1214_v43, 5  ;;  %v2879_v48 = vsel %vm1553_vm14, %v2804_v33, %v1214_v43 }
 0x4b5   :  { %1234 = vmatmul.f32.vlgmr.msra.gmra.mxu0 %v1216_v41  ;;  %1254 = vmatmul.f32.vlgmr.msra.gmra.mxu1 %v1216_v41 }
 0x4b6   :  { %1274 = vmatmul.f32.vlgmr.msrb.gmra.mxu2 %v1216_v41  ;;  %1306 = vmatmul.f32.vlgmr.msrb.gmra.mxu3 %v1216_v41 }
 0x532   :  { %v1235_v21 = vpop.f32.mrf.mxu0  ;;  %v1255_v22 = vpop.f32.mrf.mxu1 }
 0x533   :  { %v1281_v25 = vrot.slane %v1235_v21, 2  ;;  %v1282_v30 = vrot.slane %v1255_v22, 2  ;;  %v1574_v22 = vld [vmem:[#allocation7 + $0x78] sm:$0xff] }
 0x534   :  { %1579 = vmatpush.msra.mxu0 %v1574_v22 }
 0x535   :  { %v1287_v32 = vadd.f32 %v1281_v25, %v3202_v26  ;;  %v1288_v36 = vadd.f32 %v1282_v30, %v3203_v31  ;;  %v1573_v25 = vld [vmem:[#allocation7 + $0x70] sm:$0xff]  ;;  %v1572_v30 = vld [vmem:[#allocation7 + $0x68] sm:$0xff] }
 0x536   :  { %1580 = vmatpush.msra.mxu0 %v1573_v25 }
 0x537   :  { %v1651_v27 = vmul.f32 -1.442695, %v1287_v32  ;;  %v1652_v52 = vmul.f32 -1.442695, %v1288_v36  ;;  %v1571_v32 = vld [vmem:[#allocation7 + $0x60] sm:$0xff]  ;;  %v1570_v36 = vld [vmem:[#allocation7 + $0x58] sm:$0xff] }
 0x538   :  { %1581 = vmatpush.msra.mxu0 %v1572_v30 }
 0x539   :  { %1765 = vpow2.f32 %v1651_v27  ;;  %v1275_v39 = vpop.f32.mrf.mxu2  ;;  %v1307_v57 = vpop.f32.mrf.mxu3  ;;  %v1569_v27 = vld [vmem:[#allocation7 + $0x50] sm:$0xff] }
 0x53a   :  { %1767 = vpow2.f32 %v1652_v52  ;;  %v1283_v12 = vrot.slane %v1275_v39, 2  ;;  %v1311_v1 = vrot.slane %v1307_v57, 2  ;;  %1582 = vmatpush.msra.mxu0 %v1571_v32  ;;  %v1568_v52 = vld [vmem:[#allocation7 + $0x48] sm:$0xff] }
 0x53b   :  { %v1564_v57 = vld [vmem:[#allocation7 + $0x28] sm:$0xff] }
 0x53c   :  { %v1289_v33 = vadd.f32 %v1283_v12, %v3204_v7  ;;  %v1313_v8 = vadd.f32 %v1311_v1, %v3205_v10  ;;  %1583 = vmatpush.msra.mxu0 %v1570_v36 }
 0x53e   :  { %v1653_v17 = vmul.f32 -1.442695, %v1289_v33  ;;  %1584 = vmatpush.msra.mxu0 %v1569_v27  ;;  %v1566_v33 = vld [vmem:[#allocation7 + $0x38] sm:$0xff] }
 0x53f   :  { %v1766_v11 = vpop.eup %1765 }
 0x540   :  { %v1768_v20 = vpop.eup %1767  ;;  %v1323_v2 = vadd.f32 1.0, %v1766_v11  ;;  %1769 = vpow2.f32 %v1653_v17  ;;  %1585 = vmatpush.msra.mxu0 %v1568_v52 }
 0x541   :  { %v1324_v23 = vadd.f32 1.0, %v1768_v20  ;;  %v1565_v20 = vld [vmem:[#allocation7 + $0x30] sm:$0xff] }
 0x542   :  { %1771 = vrcp.f32 %v1323_v2  ;;  %v1337_v13 = vand.u32 2147483648, %v1323_v2  ;;  %v1335_v35 = vand.u32 2147483647, %v1323_v2  ;;  %vm1331_vm1 = vweird.f32 %v1323_v2 }
 0x543   :  { %1773 = vrcp.f32 %v1324_v23  ;;  %v1352_v15 = vand.u32 2147483648, %v1324_v23  ;;  %v1350_v24 = vand.u32 2147483647, %v1324_v23  ;;  %vm1346_vm2 = vweird.f32 %v1324_v23 }
 0x544   :  { %v1338_v62 = vor.u32 1.1754944e-38, %v1337_v13  ;;  %vm1336_vm5 = vcmp.eq.f32.partialorder %v1335_v35, 8.507059e+37 }
 0x545   :  { %v1353_v29 = vor.u32 1.1754944e-38, %v1352_v15  ;;  %vm1351_vm6 = vcmp.eq.f32.partialorder %v1350_v24, 8.507059e+37 }
 0x546   :  { %v1770_v3 = vpop.eup %1769 }
 0x547   :  { %v1325_v14 = vadd.f32 1.0, %v1770_v3 }
 0x548   :  { %v1772_v37 = vpop.eup %1771 }
 0x549   :  { %v1774_v4 = vpop.eup %1773  ;;  %v1327_v9 = vmul.f32 %v1772_v37, %v1323_v2  ;;  %1775 = vrcp.f32 %v1325_v14  ;;  %vm1332_vm15 = vweird.f32 %v1772_v37  ;;  %v1367_v61 = vand.u32 2147483648, %v1325_v14 }
 0x54a   :  { %v1342_v47 = vmul.f32 %v1774_v4, %v1324_v23  ;;  %1777 = vtanh.f32 %v1313_v8  ;;  %vm1347_vm0 = vweird.f32 %v1774_v4  ;;  %vm1333_vm3 = vmor %vm1331_vm1, %vm1332_vm15  ;;  %vm1361_vm8 = vweird.f32 %v1325_v14 }
 0x54b   :  { %v1328_v28 = vsub.f32 1.0, %v1327_v9  ;;  %vm1348_vm4 = vmor %vm1346_vm2, %vm1347_vm0  ;;  %v1365_v51 = vand.u32 2147483647, %v1325_v14  ;;  %v1368_v54 = vor.u32 1.1754944e-38, %v1367_v61  ;;  %v1561_v9 = vld [vmem:[#allocation7 + $0x10] sm:$0xff] }
 0x54c   :  { %v1343_v6 = vsub.f32 1.0, %v1342_v47 }
 0x54d   :  { %v1329_v34 = vmul.f32 %v1772_v37, %v1328_v28  ;;  %vm1366_vm10 = vcmp.eq.f32.partialorder %v1365_v51, 8.507059e+37  ;;  %v1560_v28 = vld [vmem:[#allocation7 + $0x8] sm:$0xff] }
 0x54e   :  { %v1344_v45 = vmul.f32 %v1774_v4, %v1343_v6 }
 0x54f   :  { %v1776_v60 = vpop.eup %1775  ;;  %v1330_v49 = vadd.f32 %v1772_v37, %v1329_v34 }
 0x550   :  { %v1357_v58 = vmul.f32 %v1776_v60, %v1325_v14  ;;  %v1345_v63 = vadd.f32 %v1774_v4, %v1344_v45  ;;  %v1778_v18 = vpop.eup %1777  ;;  %vm1362_vm7 = vweird.f32 %v1776_v60  ;;  %v1563_v14 = vld [vmem:[#allocation7 + $0x20] sm:$0xff] }
 0x551   :  { %v1334_v16 = vsel %vm1333_vm3, %v1772_v37, %v1330_v49  ;;  %vm1363_vm9 = vmor %vm1361_vm8, %vm1362_vm7  ;;  %v1562_v37 = vld [vmem:[#allocation7 + $0x18] sm:$0xff]  ;;  %vm1557_vm8 = vcmask 1046528  }
 0x552   :  { %v1358_v19 = vsub.f32 1.0, %v1357_v58  ;;  %v1339_v55 = vsel %vm1336_vm5, %v1338_v62, %v1334_v16  ;;  %v1349_v38 = vsel %vm1348_vm4, %v1774_v4, %v1345_v63 }
 0x553   :  { %v1354_v50 = vsel %vm1351_vm6, %v1353_v29, %v1349_v38  ;;  %v1376_v42 = vmul.f32 %v1778_v18, %v1339_v55 }
 0x554   :  { %v1375_v44 = vmul.f32 %v1373_v0, %v1354_v50  ;;  %v1359_v59 = vmul.f32 %v1776_v60, %v1358_v19 }
 0x556   :  { %v2886_v53 = vadd.f32 %v1376_v42, %v1375_v44  ;;  %v1360_v5 = vadd.f32 %v1776_v60, %v1359_v59 }
 0x558   :  { %1779 = vtanh.f32 %v2886_v53  ;;  %v1364_v46 = vsel %vm1363_vm9, %v1776_v60, %v1360_v5  ;;  %v1538_v61 = vrot.slane %v2886_v53, 7 }
 0x559   :  { %v1369_v56 = vsel %vm1366_vm10, %v1368_v54, %v1364_v46 }
 0x55e   :  { %v1780_v40 = vpop.eup %1779 }
 0x55f   :  { %v1379_v43 = vmul.f32 %v1780_v40, %v1369_v56 }
 0x561   :  { %v1381_v41 = vrot.slane %v1379_v43, 6  ;;  %v2890_v21 = vsel %vm1555_vm11, %v2879_v48, %v1379_v43  ;;  %v1567_v48 = vld [vmem:[#allocation7 + $0x40] sm:$0xff] }
 0x562   :  { %1586 = vmatpush.msra.mxu0 %v1567_v48 }
 0x563   :  { %1399 = vmatmul.f32.vlgmr.msrb.gmra.mxu0 %v1381_v41  ;;  %1419 = vmatmul.f32.vlgmr.msrb.gmra.mxu1 %v1381_v41 }
 0x564   :  { %1439 = vmatmul.f32.vlgmr.msra.gmra.mxu2 %v1381_v41  ;;  %1471 = vmatmul.f32.vlgmr.msra.gmra.mxu3 %v1381_v41 }
 0x565   :  { %1587 = vmatpush.msra.mxu0 %v1566_v33 }
 0x567   :  { %1588 = vmatpush.msra.mxu0 %v1565_v20 }
 0x569   :  { %1589 = vmatpush.msra.mxu0 %v1564_v57 }
 0x56b   :  { %1590 = vmatpush.msra.mxu0 %v1563_v14 }
 0x56d   :  { %1591 = vmatpush.msra.mxu0 %v1562_v37 }
 0x56f   :  { %1592 = vmatpush.msra.mxu0 %v1561_v9 }
 0x571   :  { %1593 = vmatpush.msra.mxu0 %v1560_v28 }
 0x5e0   :  { %v1400_v39 = vpop.f32.mrf.mxu0  ;;  %v1420_v12 = vpop.f32.mrf.mxu1 }
 0x5e1   :  { %v1446_v17 = vrot.slane %v1400_v39, 1  ;;  %v1447_v11 = vrot.slane %v1420_v12, 1 }
 0x5e3   :  { %v1452_v2 = vadd.f32 %v1446_v17, %v3202_v26  ;;  %v1453_v23 = vadd.f32 %v1447_v11, %v3203_v31  ;;  %v1559_v31 = vld [vmem:[#allocation7] sm:$0xff] }
 0x5e4   :  { %1594 = vmatpush.msra.mxu0 %v1559_v31  ;;  %v1668_v11 = vld [vmem:[%s2909_s5] ss:$0 sm:$0xff] }
 0x5e5   :  { %v1654_v1 = vmul.f32 -1.442695, %v1452_v2  ;;  %v1655_v3 = vmul.f32 -1.442695, %v1453_v23 }
 0x5e7   :  { %1781 = vpow2.f32 %v1654_v1  ;;  %v1440_v8 = vpop.f32.mrf.mxu2  ;;  %v1472_v35 = vpop.f32.mrf.mxu3 }
 0x5e8   :  { %1783 = vpow2.f32 %v1655_v3  ;;  %v1448_v4 = vrot.slane %v1440_v8, 1  ;;  %v1476_v45 = vrot.slane %v1472_v35, 1 }
 0x5ea   :  { %v1454_v47 = vadd.f32 %v1448_v4, %v3204_v7  ;;  %v1478_v7 = vadd.f32 %v1476_v45, %v3205_v10 }
 0x5ec   :  { %v1656_v26 = vmul.f32 -1.442695, %v1454_v47 }
 0x5ed   :  { %v1782_v6 = vpop.eup %1781 }
 0x5ee   :  { %v1784_v13 = vpop.eup %1783  ;;  %v1488_v15 = vadd.f32 1.0, %v1782_v6  ;;  %1785 = vpow2.f32 %v1656_v26 }
 0x5ef   :  { %v1489_v34 = vadd.f32 1.0, %v1784_v13 }
 0x5f0   :  { %1787 = vrcp.f32 %v1488_v15  ;;  %v1502_v16 = vand.u32 2147483648, %v1488_v15  ;;  %v1500_v55 = vand.u32 2147483647, %v1488_v15  ;;  %vm1496_vm14 = vweird.f32 %v1488_v15 }
 0x5f1   :  { %1789 = vrcp.f32 %v1489_v34  ;;  %v1517_v18 = vand.u32 2147483648, %v1489_v34  ;;  %v1515_v50 = vand.u32 2147483647, %v1489_v34  ;;  %vm1511_vm15 = vweird.f32 %v1489_v34 }
 0x5f2   :  { %v1503_v59 = vor.u32 1.1754944e-38, %v1502_v16  ;;  %vm1501_vm2 = vcmp.eq.f32.partialorder %v1500_v55, 8.507059e+37 }
 0x5f3   :  { %v1518_v51 = vor.u32 1.1754944e-38, %v1517_v18  ;;  %vm1516_vm3 = vcmp.eq.f32.partialorder %v1515_v50, 8.507059e+37 }
 0x5f4   :  { %v1786_v24 = vpop.eup %1785 }
 0x5f5   :  { %v1490_v60 = vadd.f32 1.0, %v1786_v24 }
 0x5f6   :  { %v1788_v49 = vpop.eup %1787 }
 0x5f7   :  { %v1790_v58 = vpop.eup %1789  ;;  %v1492_v62 = vmul.f32 %v1788_v49, %v1488_v15  ;;  %1791 = vrcp.f32 %v1490_v60  ;;  %vm1497_vm12 = vweird.f32 %v1788_v49  ;;  %v1532_v27 = vand.u32 2147483648, %v1490_v60 }
 0x5f8   :  { %v1507_v63 = vmul.f32 %v1790_v58, %v1489_v34  ;;  %1793 = vtanh.f32 %v1478_v7  ;;  %vm1512_vm13 = vweird.f32 %v1790_v58  ;;  %vm1498_vm0 = vmor %vm1496_vm14, %vm1497_vm12  ;;  %vm1526_vm5 = vweird.f32 %v1490_v60 }
 0x5f9   :  { %v1493_v0 = vsub.f32 1.0, %v1492_v62  ;;  %vm1513_vm1 = vmor %vm1511_vm15, %vm1512_vm13  ;;  %v1530_v53 = vand.u32 2147483647, %v1490_v60  ;;  %v1533_v48 = vor.u32 1.1754944e-38, %v1532_v27 }
 0x5fa   :  { %v1508_v29 = vsub.f32 1.0, %v1507_v63 }
 0x5fb   :  { %v1494_v19 = vmul.f32 %v1788_v49, %v1493_v0  ;;  %vm1531_vm7 = vcmp.eq.f32.partialorder %v1530_v53, 8.507059e+37 }
 0x5fc   :  { %v1509_v38 = vmul.f32 %v1790_v58, %v1508_v29 }
 0x5fd   :  { %v1792_v42 = vpop.eup %1791  ;;  %v1495_v44 = vadd.f32 %v1788_v49, %v1494_v19 }
 0x5fe   :  { %v1522_v10 = vmul.f32 %v1792_v42, %v1490_v60  ;;  %v1510_v5 = vadd.f32 %v1790_v58, %v1509_v38  ;;  %v1794_v54 = vpop.eup %1793  ;;  %vm1527_vm4 = vweird.f32 %v1792_v42 }
 0x5ff   :  { %v1499_v46 = vsel %vm1498_vm0, %v1788_v49, %v1495_v44  ;;  %vm1528_vm6 = vmor %vm1526_vm5, %vm1527_vm4 }
 0x600   :  { %v1523_v40 = vsub.f32 1.0, %v1522_v10  ;;  %v1504_v56 = vsel %vm1501_vm2, %v1503_v59, %v1499_v46  ;;  %v1514_v43 = vsel %vm1513_vm1, %v1790_v58, %v1510_v5 }
 0x601   :  { %v1519_v41 = vsel %vm1516_vm3, %v1518_v51, %v1514_v43  ;;  %v1541_v22 = vmul.f32 %v1794_v54, %v1504_v56 }
 0x602   :  { %v1540_v25 = vmul.f32 %v1538_v61, %v1519_v41  ;;  %v1524_v30 = vmul.f32 %v1792_v42, %v1523_v40 }
 0x604   :  { %v1542_v32 = vadd.f32 %v1541_v22, %v1540_v25  ;;  %v1525_v36 = vadd.f32 %v1792_v42, %v1524_v30 }
 0x606   :  { %1795 = vtanh.f32 %v1542_v32  ;;  %v1529_v52 = vsel %vm1528_vm6, %v1792_v42, %v1525_v36 }
 0x607   :  { %v1534_v12 = vsel %vm1531_vm7, %v1533_v48, %v1529_v52 }
 0x60c   :  { %v1796_v39 = vpop.eup %1795 }
 0x60d   :  { %v1544_v33 = vmul.f32 %v1796_v39, %v1534_v12 }
 0x60f   :  { %v1558_v17 = vsel %vm1557_vm8, %v2890_v21, %v1544_v33 }
 0x610   :  { %1595 = vmatmul.f32.vlgmr.msra.gmra.mxu0 %v1558_v17 }
 0x68d   :  { %v1596_v20 = vpop.f32.mrf.mxu0 }
 0x68e   :  { %v1597_v2 = vadd.f32 %v1668_v11, %v1596_v20 }
 0x690   :  { %1599 = vmax.xlane.f32.xlu0 %v1597_v2 }
 0x703   :  { %v1600_v23 = vpop.xlane.xlu0 %1599 }
 0x704   :  { %v1601_v57 = vsub.f32 %v1597_v2, %v1600_v23 }
 0x706   :  { %v1602_v1 = vmul.f32 1.442695, %v1601_v57 }
 0x708   :  { %1797 = vpow2.f32 %v1602_v1 }
 0x70e   :  { %v1798_v3 = vpop.eup %1797 }
 0x70f   :  { %1604 = vadd.xlane.f32.xlu1 %v1798_v3 }
 0x782   :  { %v1605_v14 = vpop.xlane.xlu1 %1604 }
 0x783   :  { %1799 = vlog2.f32 %v1605_v14 }
 0x789   :  { %v1800_v37 = vpop.eup %1799 }
 0x78a   :  { %v1607_v21 = vmul.f32 0.6931472, %v1800_v37 }
 0x78c   :  { %v1608_v8 = vsub.f32 %v1601_v57, %v1607_v21 }
 0x78e   :  { %1609 = vst [vmem:[#allocation8] sm:$0xff] %v1608_v8 }
 0x78f   :  { %1620 = dma.vmem_to_hbm [thread:$0]  %s1616_s18, 128, %s1618_s21, [#allocation4]  }
 0x790   :  { %1965 = dma.done.wait [#allocation4], 128  }
 0x791   :  { %1966 = vsyncadd [#allocation4], 4294967168 }
 0x792   :  { %1625 = vsyncpa [#allocation3], 1 }
 0x793   :  { %1626 = vsyncpa [#allocation6], 1 }
 0x794   :  { %1627 = vsyncpa [#allocation4], 1 }

</bundles_post_ra>
